<compile_context>
chip_gen: v7x
topology: tpu7x:2x2x1
jax: 0.10.0
libtpu: 0.0.40
codegen_flags: <defaults>
</compile_context>

<pallas_src>
import functools

import jax
import jax.numpy as jnp
from jax import lax
from jax.experimental import pallas as pl
from jax.experimental.pallas import tpu as pltpu

_NEG_BIG = -1e30  # finite "minus infinity" for masking (no NaN on fully-masked rows)


# ----------------------------------------------------------------------------
# Fused kernel: QKV proj -> per-head masked softmax attention -> concat heads
#               -> W_o proj -> +residual -> LayerNorm (torch.std, unbiased)
# ----------------------------------------------------------------------------
def _mha_fused_kernel(q_ref, k_ref, v_ref, m_ref,
                      wq_ref, wk_ref, wv_ref, wo_t_ref, g_ref, b_ref,
                      o_ref,
                      kh_ref, vh_ref, heads_ref,
                      *, n_head, d_k, eps, cache_kv, compute_dtype):
    # q_ref: (tq, d_model) f32        k_ref/v_ref: (len_k, d_model) compute_dtype
    # m_ref: (tq, len_k) int8         wq/wk/wv: (d_model, d_model) head-major, compute_dtype
    # wo_t:  (d_model, d_model) [in, out], compute_dtype
    # kh_ref/vh_ref: (len_k, d_model) compute_dtype scratch (projected K/V, cached per batch)
    # heads_ref: (tq, d_model) f32 scratch (concatenated head outputs)
    cdt = compute_dtype

    q = q_ref[...]                       # f32, kept exact for the residual add
    q_c = q.astype(cdt)

    def project_kv():
        kh_ref[...] = jnp.dot(k_ref[...], wk_ref[...],
                              preferred_element_type=jnp.float32).astype(cdt)
        vh_ref[...] = jnp.dot(v_ref[...], wv_ref[...],
                              preferred_element_type=jnp.float32).astype(cdt)

    if cache_kv:
        # K/V projections only on the first q tile of each batch; reused afterwards.
        @pl.when(pl.program_id(1) == 0)
        def _():
            project_kv()
    else:
        project_kv()

    # Full-width Q projection for all heads at once (1/sqrt(d_k) folded into wq).
    q_h = jnp.dot(q_c, wq_ref[...], preferred_element_type=jnp.float32).astype(cdt)

    masked = m_ref[...] != 0             # (tq, len_k) bool, True = masked out

    for h in range(n_head):              # static unrolled loop over heads
        lo, hi = h * d_k, (h + 1) * d_k
        qh = q_h[:, lo:hi]               # (tq, d_k)
        kh = kh_ref[:, lo:hi]            # (len_k, d_k)
        vh = vh_ref[:, lo:hi]            # (len_k, d_k)

        # scores = qh @ kh^T without materializing a transposed copy of kh.
        s = lax.dot_general(qh, kh, dimension_numbers=(((1,), (1,)), ((), ())),
                            preferred_element_type=jnp.float32)       # (tq, len_k)
        s = jnp.where(masked, _NEG_BIG, s)
        s = s - jnp.max(s, axis=-1, keepdims=True)
        p = jnp.exp(s)
        inv = pl.reciprocal(jnp.sum(p, axis=-1, keepdims=True), approx=True)  # (tq, 1)

        # PV on the un-normalized weights; normalize the (tq, d_k) result instead of
        # the (tq, len_k) matrix.  Stream the head into its slice of the scratch so
        # per-head temporaries die early.
        pv = jnp.dot(p.astype(cdt), vh, preferred_element_type=jnp.float32)   # (tq, d_k)
        heads_ref[:, lo:hi] = pv * inv

    # Output projection (pre-transposed weight) + residual (exact f32 q).
    y = jnp.dot(heads_ref[...].astype(cdt), wo_t_ref[...],
                preferred_element_type=jnp.float32) + q

    # LayerNorm with torch.std semantics: unbiased (N-1) variance, sigma clamped to eps.
    d_model = y.shape[-1]
    mu = jnp.mean(y, axis=-1, keepdims=True)
    var = jnp.sum((y - mu) ** 2, axis=-1, keepdims=True) / (d_model - 1)
    inv_sigma = jnp.minimum(lax.rsqrt(var), 1.0 / eps)   # == 1 / max(sqrt(var), eps)

    o_ref[...] = (((y - mu) * inv_sigma) * g_ref[...] + b_ref[...]).astype(o_ref.dtype)


# ----------------------------------------------------------------------------
# Wrapper
# ----------------------------------------------------------------------------
def _pick_q_tile(len_q):
    for c in (512, 256, 128):
        if len_q >= c and len_q % c == 0:
            return c
    return len_q


def _physical_vmem_bytes():
    try:
        return int(pltpu.get_tpu_info().vmem_capacity_bytes)
    except Exception:
        return 64 * 2 ** 20  # conservative default (v7x per-core VMEM)


def multi_head_att(q, k, v, attn_mask, params, *, n_head, eps=1e-6,
                   compute_dtype=jnp.bfloat16):
    bsz, len_q, d_model = q.shape
    len_k = k.shape[1]
    d_k = d_model // n_head
    temper = float(d_k) ** 0.5
    cdt = jnp.dtype(compute_dtype)

    w_qs, w_ks, w_vs = params["w_qs"], params["w_ks"], params["w_vs"]
    w_o, ln_w, ln_b = params["w_o"], params["ln_weight"], params["ln_bias"]

    # One-time XLA-side weight prep (hoisted out of the kernel):
    #   [n_head, d_model, d_k] -> head-major [d_model, n_head*d_k]; fold 1/temper into
    #   W_q; cast to the compute dtype (bf16 by default) for full-rate MXU matmuls.
    wq_full = (jnp.transpose(w_qs, (1, 0, 2)).reshape(d_model, n_head * d_k)
               * (1.0 / temper)).astype(cdt)
    wk_full = jnp.transpose(w_ks, (1, 0, 2)).reshape(d_model, n_head * d_k).astype(cdt)
    wv_full = jnp.transpose(w_vs, (1, 0, 2)).reshape(d_model, n_head * d_k).astype(cdt)
    wo_t = w_o.T.astype(cdt)                       # torch [out,in] -> [in,out]

    q_f = q.astype(jnp.float32)                    # residual stays f32
    k_c = k.astype(cdt)                            # halves K/V HBM traffic in bf16
    v_c = v.astype(cdt)
    mask_i8 = attn_mask.astype(jnp.int8)           # 1 byte/elem instead of 4
    ln_w = ln_w.astype(jnp.float32)
    ln_b = ln_b.astype(jnp.float32)

    tq = _pick_q_tile(len_q)
    n_qt = len_q // tq

    # K/V-projection caching needs each core to see i == 0 for every batch it owns,
    # i.e. the q-tile axis must be "arbitrary".  If bsz == 1 we instead expose the
    # q-tile axis to both TensorCores (v7x) and recompute the projections per tile.
    cache_kv = (bsz > 1) or (n_qt == 1)
    dim_sem = ("parallel", "arbitrary") if cache_kv else ("arbitrary", "parallel")

    # Rough VMEM budget (double-buffered tiles + resident weights + scratch + temps).
    f32b, cb = 4, cdt.itemsize
    est = (2 * f32b * tq * d_model                 # q tile (f32, double-buffered)
           + 2 * 2 * cb * len_k * d_model          # k, v tiles (compute dtype)
           + 2 * tq * len_k                        # int8 mask tile
           + 2 * f32b * tq * d_model               # output tile
           + 2 * 4 * cb * d_model * d_model        # wq/wk/wv/wo_t (pipeline buffers)
           + 2 * cb * len_k * d_model              # k_h / v_h projection scratch
           + f32b * tq * d_model                   # heads scratch
           + f32b * (3 * tq * len_k + 3 * tq * d_model))  # live temporaries
    phys = _physical_vmem_bytes()
    vmem_limit = int(min(max(int(1.3 * est), 32 * 2 ** 20), int(0.75 * phys)))

    proj_tokens = len_q + (2 * len_k if cache_kv else 2 * len_k * n_qt)
    flops = int(2 * bsz * proj_tokens * d_model * d_model        # QKV projections
                + 4 * bsz * len_q * len_k * d_model              # QK^T and PV
                + 2 * bsz * len_q * d_model * d_model)           # W_o
    transcendentals = int(bsz * n_head * len_q * len_k + bsz * len_q * (n_head + 1))
    bytes_accessed = int(f32b * (2 * bsz * len_q * d_model + 2 * d_model)
                         + cb * (2 * bsz * len_k * d_model + 4 * d_model * d_model)
                         + bsz * len_q * len_k)

    out = pl.pallas_call(
        functools.partial(_mha_fused_kernel, n_head=n_head, d_k=d_k, eps=eps,
                          cache_kv=cache_kv, compute_dtype=cdt),
        out_shape=jax.ShapeDtypeStruct((bsz, len_q, d_model), jnp.float32),
        grid_spec=pltpu.PrefetchScalarGridSpec(
            num_scalar_prefetch=0,
            grid=(bsz, n_qt),
            in_specs=[
                pl.BlockSpec((None, tq, d_model), lambda b, i: (b, i, 0)),    # q (residual)
                pl.BlockSpec((None, len_k, d_model), lambda b, i: (b, 0, 0)), # k (reused over i)
                pl.BlockSpec((None, len_k, d_model), lambda b, i: (b, 0, 0)), # v (reused over i)
                pl.BlockSpec((None, tq, len_k), lambda b, i: (b, i, 0)),      # mask int8
                pl.BlockSpec((d_model, d_model), lambda b, i: (0, 0)),        # wq (scaled)
                pl.BlockSpec((d_model, d_model), lambda b, i: (0, 0)),        # wk
                pl.BlockSpec((d_model, d_model), lambda b, i: (0, 0)),        # wv
                pl.BlockSpec((d_model, d_model), lambda b, i: (0, 0)),        # wo^T
                pl.BlockSpec((1, d_model), lambda b, i: (0, 0)),              # ln weight
                pl.BlockSpec((1, d_model), lambda b, i: (0, 0)),              # ln bias
            ],
            out_specs=pl.BlockSpec((None, tq, d_model), lambda b, i: (b, i, 0)),
            scratch_shapes=[
                pltpu.VMEM((len_k, d_model), cdt),          # projected K (per-batch cache)
                pltpu.VMEM((len_k, d_model), cdt),          # projected V (per-batch cache)
                pltpu.VMEM((tq, d_model), jnp.float32),     # concatenated head outputs
            ],
        ),
        compiler_params=pltpu.CompilerParams(
            dimension_semantics=dim_sem,
            vmem_limit_bytes=vmem_limit),
        cost_estimate=pl.CostEstimate(flops=flops,
                                      transcendentals=transcendentals,
                                      bytes_accessed=bytes_accessed),
    )(q_f, k_c, v_c, mask_i8, wq_full, wk_full, wv_full, wo_t, ln_w, ln_b)

    return out


# ----------------------------------------------------------------------------
# Pure-JAX reference (sanity check)
# ----------------------------------------------------------------------------
def reference(q, k, v, attn_mask, params, *, n_head, eps=1e-6):
    bsz, len_q, d_model = q.shape
    d_k = d_model // n_head
    temper = float(d_k) ** 0.5
    qh = jnp.einsum("bld,hdk->hblk", q, params["w_qs"])
    kh = jnp.einsum("bld,hdk->hblk", k, params["w_ks"])
    vh = jnp.einsum("bld,hdk->hblk", v, params["w_vs"])
    s = jnp.einsum("hbqk,hbjk->hbqj", qh, kh) / temper
    s = jnp.where(attn_mask[None], -jnp.inf, s)
    p = jax.nn.softmax(s, axis=-1)
    o = jnp.einsum("hbqj,hbjk->hbqk", p, vh)
    heads = jnp.transpose(o, (1, 2, 0, 3)).reshape(bsz, len_q, d_model)
    y = heads @ params["w_o"].T + q
    mu = jnp.mean(y, axis=-1, keepdims=True)
    var = jnp.sum((y - mu) ** 2, axis=-1, keepdims=True) / (d_model - 1)
    sigma = jnp.maximum(jnp.sqrt(var), eps)
    return (y - mu) / sigma * params["ln_weight"][0] + params["ln_bias"][0]


# ----------------------------------------------------------------------------
def make_params(key, n_head, d_model):
    d_k = d_model // n_head
    k1, k2, k3, k4 = jax.random.split(key, 4)

    def xavier(kk, shape, fan_in, fan_out):
        std = (2.0 / (fan_in + fan_out)) ** 0.5
        return std * jax.random.normal(kk, shape, dtype=jnp.float32)

    return {
        "w_qs": xavier(k1, (n_head, d_model, d_k), d_model, d_k),
        "w_ks": xavier(k2, (n_head, d_model, d_k), d_model, d_k),
        "w_vs": xavier(k3, (n_head, d_model, d_k), d_model, d_k),
        "w_o": xavier(k4, (d_model, d_model), d_model, d_model),  # torch Linear layout [out,in]
        "ln_weight": jnp.ones((1, d_model), jnp.float32),
        "ln_bias": jnp.zeros((1, d_model), jnp.float32),
    }


if __name__ == "__main__":
    n_head, d_model = 4, 32
    bsz, seq = 2, 8

    key = jax.random.PRNGKey(0)
    kq, kk, kv, kp = jax.random.split(key, 4)
    q = jax.random.normal(kq, (bsz, seq, d_model), dtype=jnp.float32)
    k = jax.random.normal(kk, (bsz, seq, d_model), dtype=jnp.float32)
    v = jax.random.normal(kv, (bsz, seq, d_model), dtype=jnp.float32)

    # Causal-style boolean mask (True = masked); every row keeps >=1 valid entry.
    idx = jnp.arange(seq)
    attn_mask = jnp.broadcast_to(idx[None, :] > idx[:, None], (bsz, seq, seq))

    params = make_params(kp, n_head, d_model)
    ref = reference(q, k, v, attn_mask, params, n_head=n_head)

    # Default (bf16-compute) path.
    out_bf16 = multi_head_att(q, k, v, attn_mask, params, n_head=n_head)
    jax.block_until_ready(out_bf16)
    assert jnp.allclose(out_bf16, ref, atol=6e-2, rtol=6e-2), "bf16 path mismatch vs reference"

    # Full-precision path for tighter validation.
    out_f32 = multi_head_att(q, k, v, attn_mask, params, n_head=n_head,
                             compute_dtype=jnp.float32)
    jax.block_until_ready(out_f32)
    assert jnp.allclose(out_f32, ref, atol=1e-2, rtol=1e-2), "f32 path mismatch vs reference"

    print("KERNEL_OK")
</pallas_src>

<mosaic_0001>
module attributes {stable_mosaic.version = 11 : i64} {
  func.func @_mha_fused_kernel(%arg0: i32, %arg1: i32, %arg2: memref<1x8x32xf32, #tpu.memory_space<vmem>>, %arg3: memref<1x8x32xbf16, #tpu.memory_space<vmem>>, %arg4: memref<1x8x32xbf16, #tpu.memory_space<vmem>>, %arg5: memref<1x8x8xi8, #tpu.memory_space<vmem>>, %arg6: memref<32x32xbf16, #tpu.memory_space<vmem>>, %arg7: memref<32x32xbf16, #tpu.memory_space<vmem>>, %arg8: memref<32x32xbf16, #tpu.memory_space<vmem>>, %arg9: memref<32x32xbf16, #tpu.memory_space<vmem>>, %arg10: memref<1x32xf32, #tpu.memory_space<vmem>>, %arg11: memref<1x32xf32, #tpu.memory_space<vmem>>, %arg12: memref<1x8x32xf32, #tpu.memory_space<vmem>>, %arg13: memref<8x32xbf16, #tpu.memory_space<vmem>>, %arg14: memref<8x32xbf16, #tpu.memory_space<vmem>>, %arg15: memref<8x32xf32, #tpu.memory_space<vmem>>) attributes {dimension_semantics = [#tpu.dimension_semantics<parallel>, #tpu.dimension_semantics<arbitrary>], iteration_bounds = array<i64: 2, 1>, scalar_prefetch = 0 : i64, scratch_operands = 3 : i64, tpu.core_type = #tpu.core_type<tc>, window_params = [{transform_indices = @transform_0, window_bounds = array<i64: 1, 8, 32>}, {transform_indices = @transform_1, window_bounds = array<i64: 1, 8, 32>}, {transform_indices = @transform_2, window_bounds = array<i64: 1, 8, 32>}, {transform_indices = @transform_3, window_bounds = array<i64: 1, 8, 8>}, {pipeline_mode = #tpu.pipeline_mode<synchronous>, transform_indices = @transform_4, window_bounds = array<i64: 32, 32>}, {pipeline_mode = #tpu.pipeline_mode<synchronous>, transform_indices = @transform_5, window_bounds = array<i64: 32, 32>}, {pipeline_mode = #tpu.pipeline_mode<synchronous>, transform_indices = @transform_6, window_bounds = array<i64: 32, 32>}, {pipeline_mode = #tpu.pipeline_mode<synchronous>, transform_indices = @transform_7, window_bounds = array<i64: 32, 32>}, {pipeline_mode = #tpu.pipeline_mode<synchronous>, transform_indices = @transform_8, window_bounds = array<i64: 1, 32>}, {pipeline_mode = #tpu.pipeline_mode<synchronous>, transform_indices = @transform_9, window_bounds = array<i64: 1, 32>}, {transform_indices = @transform_10, window_bounds = array<i64: 1, 8, 32>}]} {
    %c0 = arith.constant 0 : index
    %c0_0 = arith.constant 0 : index
    %c0_1 = arith.constant 0 : index
    %0 = vector.load %arg2[%c0, %c0_0, %c0_1] : memref<1x8x32xf32, #tpu.memory_space<vmem>>, vector<1x8x32xf32>
    %1 = vector.shape_cast %0 : vector<1x8x32xf32> to vector<8x32xf32>
    %2 = arith.truncf %1 : vector<8x32xf32> to vector<8x32xbf16>
    %c0_i32 = arith.constant 0 : i32
    %3 = arith.cmpi eq, %arg1, %c0_i32 : i32
    %4 = arith.extui %3 : i1 to i32
    %c0_i32_2 = arith.constant 0 : i32
    %5 = arith.cmpi ne, %4, %c0_i32_2 : i32
    scf.if %5 {
      %c0_66 = arith.constant 0 : index
      %c0_67 = arith.constant 0 : index
      %c0_68 = arith.constant 0 : index
      %121 = vector.load %arg3[%c0_66, %c0_67, %c0_68] : memref<1x8x32xbf16, #tpu.memory_space<vmem>>, vector<1x8x32xbf16>
      %122 = vector.shape_cast %121 : vector<1x8x32xbf16> to vector<8x32xbf16>
      %c0_69 = arith.constant 0 : index
      %c0_70 = arith.constant 0 : index
      %123 = vector.load %arg7[%c0_69, %c0_70] : memref<32x32xbf16, #tpu.memory_space<vmem>>, vector<32x32xbf16>
      %cst_71 = arith.constant dense<0.000000e+00> : vector<8x32xf32>
      %124 = tpu.matmul %122, %123, %cst_71 {dimension_numbers = #tpu.dot_dimension_numbers<[1], [0], [0], [1], [0, 0, 1, 1], [], []>} : vector<8x32xbf16>, vector<32x32xbf16>, vector<8x32xf32> -> vector<8x32xf32>
      %125 = arith.truncf %124 : vector<8x32xf32> to vector<8x32xbf16>
      %c0_72 = arith.constant 0 : index
      %c0_73 = arith.constant 0 : index
      %126 = vector.load %arg13[%c0_72, %c0_73] : memref<8x32xbf16, #tpu.memory_space<vmem>>, vector<8x32xbf16>
      tpu.vector_store %arg13[%c0_72, %c0_73], %125 {strides = array<i32>} : memref<8x32xbf16, #tpu.memory_space<vmem>>, vector<8x32xbf16>,
      %c0_74 = arith.constant 0 : index
      %c0_75 = arith.constant 0 : index
      %c0_76 = arith.constant 0 : index
      %127 = vector.load %arg4[%c0_74, %c0_75, %c0_76] : memref<1x8x32xbf16, #tpu.memory_space<vmem>>, vector<1x8x32xbf16>
      %128 = vector.shape_cast %127 : vector<1x8x32xbf16> to vector<8x32xbf16>
      %c0_77 = arith.constant 0 : index
      %c0_78 = arith.constant 0 : index
      %129 = vector.load %arg8[%c0_77, %c0_78] : memref<32x32xbf16, #tpu.memory_space<vmem>>, vector<32x32xbf16>
      %cst_79 = arith.constant dense<0.000000e+00> : vector<8x32xf32>
      %130 = tpu.matmul %128, %129, %cst_79 {dimension_numbers = #tpu.dot_dimension_numbers<[1], [0], [0], [1], [0, 0, 1, 1], [], []>} : vector<8x32xbf16>, vector<32x32xbf16>, vector<8x32xf32> -> vector<8x32xf32>
      %131 = arith.truncf %130 : vector<8x32xf32> to vector<8x32xbf16>
      %c0_80 = arith.constant 0 : index
      %c0_81 = arith.constant 0 : index
      %132 = vector.load %arg14[%c0_80, %c0_81] : memref<8x32xbf16, #tpu.memory_space<vmem>>, vector<8x32xbf16>
      tpu.vector_store %arg14[%c0_80, %c0_81], %131 {strides = array<i32>} : memref<8x32xbf16, #tpu.memory_space<vmem>>, vector<8x32xbf16>,
    } else {
    }
    %c0_3 = arith.constant 0 : index
    %c0_4 = arith.constant 0 : index
    %6 = vector.load %arg6[%c0_3, %c0_4] : memref<32x32xbf16, #tpu.memory_space<vmem>>, vector<32x32xbf16>
    %cst = arith.constant dense<0.000000e+00> : vector<8x32xf32>
    %7 = tpu.matmul %2, %6, %cst {dimension_numbers = #tpu.dot_dimension_numbers<[1], [0], [0], [1], [0, 0, 1, 1], [], []>} : vector<8x32xbf16>, vector<32x32xbf16>, vector<8x32xf32> -> vector<8x32xf32>
    %8 = arith.truncf %7 : vector<8x32xf32> to vector<8x32xbf16>
    %c0_5 = arith.constant 0 : index
    %c0_6 = arith.constant 0 : index
    %c0_7 = arith.constant 0 : index
    %9 = vector.load %arg5[%c0_5, %c0_6, %c0_7] : memref<1x8x8xi8, #tpu.memory_space<vmem>>, vector<1x8x8xi8>
    %10 = vector.shape_cast %9 : vector<1x8x8xi8> to vector<8x8xi8>
    %c0_i8 = arith.constant 0 : i8
    %11 = vector.broadcast %c0_i8 : i8 to vector<8x8xi8>
    %12 = arith.cmpi ne, %10, %11 : vector<8x8xi8>
    %13 = vector.extract_strided_slice %8 {offsets = [0, 0], sizes = [8, 8], strides = [1, 1]} : vector<8x32xbf16> to vector<8x8xbf16>
    %c0_8 = arith.constant 0 : index
    %c0_9 = arith.constant 0 : index
    %14 = vector.load %arg13[%c0_8, %c0_9] : memref<8x32xbf16, #tpu.memory_space<vmem>>, vector<8x8xbf16>
    %c0_10 = arith.constant 0 : index
    %c0_11 = arith.constant 0 : index
    %15 = vector.load %arg14[%c0_10, %c0_11] : memref<8x32xbf16, #tpu.memory_space<vmem>>, vector<8x8xbf16>
    %cst_12 = arith.constant dense<0.000000e+00> : vector<8x8xf32>
    %16 = tpu.matmul %13, %14, %cst_12 {dimension_numbers = #tpu.dot_dimension_numbers<[1], [1], [0], [0], [0, 0, 1, 0], [], []>} : vector<8x8xbf16>, vector<8x8xbf16>, vector<8x8xf32> -> vector<8x8xf32>
    %cst_13 = arith.constant -1.000000e+30 : f32
    %17 = vector.broadcast %cst_13 : f32 to vector<8x8xf32>
    %18 = arith.select %12, %17, %16 : vector<8x8xi1>, vector<8x8xf32>
    %cst_14 = arith.constant dense<0xFF800000> : vector<8xf32>
    %19 = vector.multi_reduction <maximumf>, %18, %cst_14 [1] : vector<8x8xf32> to vector<8xf32>
    %20 = vector.shape_cast %19 : vector<8xf32> to vector<8x1xf32>
    %21 = vector.broadcast %20 : vector<8x1xf32> to vector<8x8xf32>
    %22 = arith.subf %18, %21 : vector<8x8xf32>
    %23 = math.exp %22 : vector<8x8xf32>
    %cst_15 = arith.constant dense<0.000000e+00> : vector<8xf32>
    %24 = vector.multi_reduction <add>, %23, %cst_15 [1] : vector<8x8xf32> to vector<8xf32>
    %25 = vector.shape_cast %24 : vector<8xf32> to vector<8x1xf32>
    %26 = tpu.reciprocal %25 {approx = true} : vector<8x1xf32> -> vector<8x1xf32>
    %27 = arith.truncf %23 : vector<8x8xf32> to vector<8x8xbf16>
    %cst_16 = arith.constant dense<0.000000e+00> : vector<8x8xf32>
    %28 = tpu.matmul %27, %15, %cst_16 {dimension_numbers = #tpu.dot_dimension_numbers<[1], [0], [0], [1], [0, 0, 1, 1], [], []>} : vector<8x8xbf16>, vector<8x8xbf16>, vector<8x8xf32> -> vector<8x8xf32>
    %29 = vector.broadcast %26 : vector<8x1xf32> to vector<8x8xf32>
    %30 = arith.mulf %28, %29 : vector<8x8xf32>
    %c0_17 = arith.constant 0 : index
    %c0_18 = arith.constant 0 : index
    %31 = vector.load %arg15[%c0_17, %c0_18] : memref<8x32xf32, #tpu.memory_space<vmem>>, vector<8x8xf32>
    tpu.vector_store %arg15[%c0_17, %c0_18], %30 {strides = array<i32>} : memref<8x32xf32, #tpu.memory_space<vmem>>, vector<8x8xf32>,
    %32 = vector.extract_strided_slice %8 {offsets = [0, 8], sizes = [8, 8], strides = [1, 1]} : vector<8x32xbf16> to vector<8x8xbf16>
    %c0_19 = arith.constant 0 : index
    %c8 = arith.constant 8 : index
    %33 = vector.load %arg13[%c0_19, %c8] : memref<8x32xbf16, #tpu.memory_space<vmem>>, vector<8x8xbf16>
    %c0_20 = arith.constant 0 : index
    %c8_21 = arith.constant 8 : index
    %34 = vector.load %arg14[%c0_20, %c8_21] : memref<8x32xbf16, #tpu.memory_space<vmem>>, vector<8x8xbf16>
    %cst_22 = arith.constant dense<0.000000e+00> : vector<8x8xf32>
    %35 = tpu.matmul %32, %33, %cst_22 {dimension_numbers = #tpu.dot_dimension_numbers<[1], [1], [0], [0], [0, 0, 1, 0], [], []>} : vector<8x8xbf16>, vector<8x8xbf16>, vector<8x8xf32> -> vector<8x8xf32>
    %cst_23 = arith.constant -1.000000e+30 : f32
    %36 = vector.broadcast %cst_23 : f32 to vector<8x8xf32>
    %37 = arith.select %12, %36, %35 : vector<8x8xi1>, vector<8x8xf32>
    %cst_24 = arith.constant dense<0xFF800000> : vector<8xf32>
    %38 = vector.multi_reduction <maximumf>, %37, %cst_24 [1] : vector<8x8xf32> to vector<8xf32>
    %39 = vector.shape_cast %38 : vector<8xf32> to vector<8x1xf32>
    %40 = vector.broadcast %39 : vector<8x1xf32> to vector<8x8xf32>
    %41 = arith.subf %37, %40 : vector<8x8xf32>
    %42 = math.exp %41 : vector<8x8xf32>
    %cst_25 = arith.constant dense<0.000000e+00> : vector<8xf32>
    %43 = vector.multi_reduction <add>, %42, %cst_25 [1] : vector<8x8xf32> to vector<8xf32>
    %44 = vector.shape_cast %43 : vector<8xf32> to vector<8x1xf32>
    %45 = tpu.reciprocal %44 {approx = true} : vector<8x1xf32> -> vector<8x1xf32>
    %46 = arith.truncf %42 : vector<8x8xf32> to vector<8x8xbf16>
    %cst_26 = arith.constant dense<0.000000e+00> : vector<8x8xf32>
    %47 = tpu.matmul %46, %34, %cst_26 {dimension_numbers = #tpu.dot_dimension_numbers<[1], [0], [0], [1], [0, 0, 1, 1], [], []>} : vector<8x8xbf16>, vector<8x8xbf16>, vector<8x8xf32> -> vector<8x8xf32>
    %48 = vector.broadcast %45 : vector<8x1xf32> to vector<8x8xf32>
    %49 = arith.mulf %47, %48 : vector<8x8xf32>
    %c0_27 = arith.constant 0 : index
    %c8_28 = arith.constant 8 : index
    %50 = vector.load %arg15[%c0_27, %c8_28] : memref<8x32xf32, #tpu.memory_space<vmem>>, vector<8x8xf32>
    tpu.vector_store %arg15[%c0_27, %c8_28], %49 {strides = array<i32>} : memref<8x32xf32, #tpu.memory_space<vmem>>, vector<8x8xf32>,
    %51 = vector.extract_strided_slice %8 {offsets = [0, 16], sizes = [8, 8], strides = [1, 1]} : vector<8x32xbf16> to vector<8x8xbf16>
    %c0_29 = arith.constant 0 : index
    %c16 = arith.constant 16 : index
    %52 = vector.load %arg13[%c0_29, %c16] : memref<8x32xbf16, #tpu.memory_space<vmem>>, vector<8x8xbf16>
    %c0_30 = arith.constant 0 : index
    %c16_31 = arith.constant 16 : index
    %53 = vector.load %arg14[%c0_30, %c16_31] : memref<8x32xbf16, #tpu.memory_space<vmem>>, vector<8x8xbf16>
    %cst_32 = arith.constant dense<0.000000e+00> : vector<8x8xf32>
    %54 = tpu.matmul %51, %52, %cst_32 {dimension_numbers = #tpu.dot_dimension_numbers<[1], [1], [0], [0], [0, 0, 1, 0], [], []>} : vector<8x8xbf16>, vector<8x8xbf16>, vector<8x8xf32> -> vector<8x8xf32>
    %cst_33 = arith.constant -1.000000e+30 : f32
    %55 = vector.broadcast %cst_33 : f32 to vector<8x8xf32>
    %56 = arith.select %12, %55, %54 : vector<8x8xi1>, vector<8x8xf32>
    %cst_34 = arith.constant dense<0xFF800000> : vector<8xf32>
    %57 = vector.multi_reduction <maximumf>, %56, %cst_34 [1] : vector<8x8xf32> to vector<8xf32>
    %58 = vector.shape_cast %57 : vector<8xf32> to vector<8x1xf32>
    %59 = vector.broadcast %58 : vector<8x1xf32> to vector<8x8xf32>
    %60 = arith.subf %56, %59 : vector<8x8xf32>
    %61 = math.exp %60 : vector<8x8xf32>
    %cst_35 = arith.constant dense<0.000000e+00> : vector<8xf32>
    %62 = vector.multi_reduction <add>, %61, %cst_35 [1] : vector<8x8xf32> to vector<8xf32>
    %63 = vector.shape_cast %62 : vector<8xf32> to vector<8x1xf32>
    %64 = tpu.reciprocal %63 {approx = true} : vector<8x1xf32> -> vector<8x1xf32>
    %65 = arith.truncf %61 : vector<8x8xf32> to vector<8x8xbf16>
    %cst_36 = arith.constant dense<0.000000e+00> : vector<8x8xf32>
    %66 = tpu.matmul %65, %53, %cst_36 {dimension_numbers = #tpu.dot_dimension_numbers<[1], [0], [0], [1], [0, 0, 1, 1], [], []>} : vector<8x8xbf16>, vector<8x8xbf16>, vector<8x8xf32> -> vector<8x8xf32>
    %67 = vector.broadcast %64 : vector<8x1xf32> to vector<8x8xf32>
    %68 = arith.mulf %66, %67 : vector<8x8xf32>
    %c0_37 = arith.constant 0 : index
    %c16_38 = arith.constant 16 : index
    %69 = vector.load %arg15[%c0_37, %c16_38] : memref<8x32xf32, #tpu.memory_space<vmem>>, vector<8x8xf32>
    tpu.vector_store %arg15[%c0_37, %c16_38], %68 {strides = array<i32>} : memref<8x32xf32, #tpu.memory_space<vmem>>, vector<8x8xf32>,
    %70 = vector.extract_strided_slice %8 {offsets = [0, 24], sizes = [8, 8], strides = [1, 1]} : vector<8x32xbf16> to vector<8x8xbf16>
    %c0_39 = arith.constant 0 : index
    %c24 = arith.constant 24 : index
    %71 = vector.load %arg13[%c0_39, %c24] : memref<8x32xbf16, #tpu.memory_space<vmem>>, vector<8x8xbf16>
    %c0_40 = arith.constant 0 : index
    %c24_41 = arith.constant 24 : index
    %72 = vector.load %arg14[%c0_40, %c24_41] : memref<8x32xbf16, #tpu.memory_space<vmem>>, vector<8x8xbf16>
    %cst_42 = arith.constant dense<0.000000e+00> : vector<8x8xf32>
    %73 = tpu.matmul %70, %71, %cst_42 {dimension_numbers = #tpu.dot_dimension_numbers<[1], [1], [0], [0], [0, 0, 1, 0], [], []>} : vector<8x8xbf16>, vector<8x8xbf16>, vector<8x8xf32> -> vector<8x8xf32>
    %cst_43 = arith.constant -1.000000e+30 : f32
    %74 = vector.broadcast %cst_43 : f32 to vector<8x8xf32>
    %75 = arith.select %12, %74, %73 : vector<8x8xi1>, vector<8x8xf32>
    %cst_44 = arith.constant dense<0xFF800000> : vector<8xf32>
    %76 = vector.multi_reduction <maximumf>, %75, %cst_44 [1] : vector<8x8xf32> to vector<8xf32>
    %77 = vector.shape_cast %76 : vector<8xf32> to vector<8x1xf32>
    %78 = vector.broadcast %77 : vector<8x1xf32> to vector<8x8xf32>
    %79 = arith.subf %75, %78 : vector<8x8xf32>
    %80 = math.exp %79 : vector<8x8xf32>
    %cst_45 = arith.constant dense<0.000000e+00> : vector<8xf32>
    %81 = vector.multi_reduction <add>, %80, %cst_45 [1] : vector<8x8xf32> to vector<8xf32>
    %82 = vector.shape_cast %81 : vector<8xf32> to vector<8x1xf32>
    %83 = tpu.reciprocal %82 {approx = true} : vector<8x1xf32> -> vector<8x1xf32>
    %84 = arith.truncf %80 : vector<8x8xf32> to vector<8x8xbf16>
    %cst_46 = arith.constant dense<0.000000e+00> : vector<8x8xf32>
    %85 = tpu.matmul %84, %72, %cst_46 {dimension_numbers = #tpu.dot_dimension_numbers<[1], [0], [0], [1], [0, 0, 1, 1], [], []>} : vector<8x8xbf16>, vector<8x8xbf16>, vector<8x8xf32> -> vector<8x8xf32>
    %86 = vector.broadcast %83 : vector<8x1xf32> to vector<8x8xf32>
    %87 = arith.mulf %85, %86 : vector<8x8xf32>
    %c0_47 = arith.constant 0 : index
    %c24_48 = arith.constant 24 : index
    %88 = vector.load %arg15[%c0_47, %c24_48] : memref<8x32xf32, #tpu.memory_space<vmem>>, vector<8x8xf32>
    tpu.vector_store %arg15[%c0_47, %c24_48], %87 {strides = array<i32>} : memref<8x32xf32, #tpu.memory_space<vmem>>, vector<8x8xf32>,
    %c0_49 = arith.constant 0 : index
    %c0_50 = arith.constant 0 : index
    %89 = vector.load %arg15[%c0_49, %c0_50] : memref<8x32xf32, #tpu.memory_space<vmem>>, vector<8x32xf32>
    %90 = arith.truncf %89 : vector<8x32xf32> to vector<8x32xbf16>
    %c0_51 = arith.constant 0 : index
    %c0_52 = arith.constant 0 : index
    %91 = vector.load %arg9[%c0_51, %c0_52] : memref<32x32xbf16, #tpu.memory_space<vmem>>, vector<32x32xbf16>
    %cst_53 = arith.constant dense<0.000000e+00> : vector<8x32xf32>
    %92 = tpu.matmul %90, %91, %cst_53 {dimension_numbers = #tpu.dot_dimension_numbers<[1], [0], [0], [1], [0, 0, 1, 1], [], []>} : vector<8x32xbf16>, vector<32x32xbf16>, vector<8x32xf32> -> vector<8x32xf32>
    %93 = arith.addf %92, %1 : vector<8x32xf32>
    %cst_54 = arith.constant dense<0.000000e+00> : vector<8xf32>
    %94 = vector.multi_reduction <add>, %93, %cst_54 [1] : vector<8x32xf32> to vector<8xf32>
    %95 = vector.shape_cast %94 : vector<8xf32> to vector<8x1xf32>
    %cst_55 = arith.constant 3.200000e+01 : f32
    %96 = vector.broadcast %cst_55 : f32 to vector<8x1xf32>
    %97 = arith.divf %95, %96 : vector<8x1xf32>
    %98 = vector.broadcast %97 : vector<8x1xf32> to vector<8x32xf32>
    %99 = arith.subf %93, %98 : vector<8x32xf32>
    %100 = arith.mulf %99, %99 : vector<8x32xf32>
    %cst_56 = arith.constant dense<0.000000e+00> : vector<8xf32>
    %101 = vector.multi_reduction <add>, %100, %cst_56 [1] : vector<8x32xf32> to vector<8xf32>
    %102 = vector.shape_cast %101 : vector<8xf32> to vector<8x1xf32>
    %cst_57 = arith.constant 3.100000e+01 : f32
    %103 = vector.broadcast %cst_57 : f32 to vector<8x1xf32>
    %104 = arith.divf %102, %103 : vector<8x1xf32>
    %105 = math.rsqrt %104 : vector<8x1xf32>
    %cst_58 = arith.constant 1.000000e+06 : f32
    %106 = vector.broadcast %cst_58 : f32 to vector<8x1xf32>
    %107 = arith.minimumf %105, %106 : vector<8x1xf32>
    %108 = vector.broadcast %97 : vector<8x1xf32> to vector<8x32xf32>
    %109 = arith.subf %93, %108 : vector<8x32xf32>
    %110 = vector.broadcast %107 : vector<8x1xf32> to vector<8x32xf32>
    %111 = arith.mulf %109, %110 : vector<8x32xf32>
    %c0_59 = arith.constant 0 : index
    %c0_60 = arith.constant 0 : index
    %112 = vector.load %arg10[%c0_59, %c0_60] : memref<1x32xf32, #tpu.memory_space<vmem>>, vector<1x32xf32>
    %113 = vector.broadcast %112 : vector<1x32xf32> to vector<8x32xf32>
    %114 = arith.mulf %111, %113 : vector<8x32xf32>
    %c0_61 = arith.constant 0 : index
    %c0_62 = arith.constant 0 : index
    %115 = vector.load %arg11[%c0_61, %c0_62] : memref<1x32xf32, #tpu.memory_space<vmem>>, vector<1x32xf32>
    %116 = vector.broadcast %115 : vector<1x32xf32> to vector<8x32xf32>
    %117 = arith.addf %114, %116 : vector<8x32xf32>
    %c0_63 = arith.constant 0 : index
    %c0_64 = arith.constant 0 : index
    %c0_65 = arith.constant 0 : index
    %118 = vector.load %arg12[%c0_63, %c0_64, %c0_65] : memref<1x8x32xf32, #tpu.memory_space<vmem>>, vector<1x8x32xf32>
    %119 = vector.shape_cast %118 : vector<1x8x32xf32> to vector<8x32xf32>
    %120 = vector.shape_cast %117 : vector<8x32xf32> to vector<1x8x32xf32>
    tpu.vector_store %arg12[%c0_63, %c0_64, %c0_65], %120 {strides = array<i32>} : memref<1x8x32xf32, #tpu.memory_space<vmem>>, vector<1x8x32xf32>,
    return
  }
  func.func @transform_0(%arg0: i32, %arg1: i32) -> (i32, i32, i32) {
    %c0_i32 = arith.constant 0 : i32
    %c0_i32_0 = arith.constant 0 : i32
    return %arg0, %arg1, %c0_i32 : i32, i32, i32
  }
  func.func @transform_1(%arg0: i32, %arg1: i32) -> (i32, i32, i32) {
    %c0_i32 = arith.constant 0 : i32
    %c0_i32_0 = arith.constant 0 : i32
    %c0_i32_1 = arith.constant 0 : i32
    return %arg0, %c0_i32, %c0_i32_0 : i32, i32, i32
  }
  func.func @transform_2(%arg0: i32, %arg1: i32) -> (i32, i32, i32) {
    %c0_i32 = arith.constant 0 : i32
    %c0_i32_0 = arith.constant 0 : i32
    %c0_i32_1 = arith.constant 0 : i32
    return %arg0, %c0_i32, %c0_i32_0 : i32, i32, i32
  }
  func.func @transform_3(%arg0: i32, %arg1: i32) -> (i32, i32, i32) {
    %c0_i32 = arith.constant 0 : i32
    %c0_i32_0 = arith.constant 0 : i32
    return %arg0, %arg1, %c0_i32 : i32, i32, i32
  }
  func.func @transform_4(%arg0: i32, %arg1: i32) -> (i32, i32) {
    %c0_i32 = arith.constant 0 : i32
    %c0_i32_0 = arith.constant 0 : i32
    %c0_i32_1 = arith.constant 0 : i32
    return %c0_i32, %c0_i32_0 : i32, i32
  }
  func.func @transform_5(%arg0: i32, %arg1: i32) -> (i32, i32) {
    %c0_i32 = arith.constant 0 : i32
    %c0_i32_0 = arith.constant 0 : i32
    %c0_i32_1 = arith.constant 0 : i32
    return %c0_i32, %c0_i32_0 : i32, i32
  }
  func.func @transform_6(%arg0: i32, %arg1: i32) -> (i32, i32) {
    %c0_i32 = arith.constant 0 : i32
    %c0_i32_0 = arith.constant 0 : i32
    %c0_i32_1 = arith.constant 0 : i32
    return %c0_i32, %c0_i32_0 : i32, i32
  }
  func.func @transform_7(%arg0: i32, %arg1: i32) -> (i32, i32) {
    %c0_i32 = arith.constant 0 : i32
    %c0_i32_0 = arith.constant 0 : i32
    %c0_i32_1 = arith.constant 0 : i32
    return %c0_i32, %c0_i32_0 : i32, i32
  }
  func.func @transform_8(%arg0: i32, %arg1: i32) -> (i32, i32) {
    %c0_i32 = arith.constant 0 : i32
    %c0_i32_0 = arith.constant 0 : i32
    %c0_i32_1 = arith.constant 0 : i32
    return %c0_i32, %c0_i32_0 : i32, i32
  }
  func.func @transform_9(%arg0: i32, %arg1: i32) -> (i32, i32) {
    %c0_i32 = arith.constant 0 : i32
    %c0_i32_0 = arith.constant 0 : i32
    %c0_i32_1 = arith.constant 0 : i32
    return %c0_i32, %c0_i32_0 : i32, i32
  }
  func.func @transform_10(%arg0: i32, %arg1: i32) -> (i32, i32, i32) {
    %c0_i32 = arith.constant 0 : i32
    %c0_i32_0 = arith.constant 0 : i32
    return %arg0, %arg1, %c0_i32 : i32, i32, i32
  }
}

</mosaic_0001>

<bundles_post_ra>
// kernel: tpu_custom_call.1
= control target key start
LH: loop header
LB: loop body
LE: loop exit
PB: predicated region body
PF: predicated region fallthrough
CT: control target
= control target key end

     0   :  { %s2715_s0 = inlined_call_operand.hbm [shape: f32[2,8,32], index: 0, kind: input, shape index: {}]   ;;  %s2716_s1 = inlined_call_operand.hbm [shape: bf16[2,8,32], index: 1, kind: input, shape index: {}]   ;;  %s2717_s2 = inlined_call_operand.hbm [shape: bf16[2,8,32], index: 2, kind: input, shape index: {}]   ;;  %s2718_s3 = inlined_call_operand.hbm [shape: s8[2,8,8], index: 3, kind: input, shape index: {}]   ;;  %s2719_s4 = inlined_call_operand.hbm [shape: bf16[32,32], index: 4, kind: input, shape index: {}]   ;;  %s2720_s5 = inlined_call_operand.vmem [shape: bf16[32,32], index: 5, kind: input, shape index: {}]   ;;  %s2721_s6 = inlined_call_operand.hbm [shape: bf16[32,32], index: 6, kind: input, shape index: {}]   ;;  %s2722_s7 = inlined_call_operand.hbm [shape: bf16[32,32], index: 7, kind: input, shape index: {}]   ;;  %s2723_s8 = inlined_call_operand.vmem [shape: f32[1,32], index: 8, kind: input, shape index: {}]   ;;  %s2724_s9 = inlined_call_operand.vmem [shape: f32[1,32], index: 9, kind: input, shape index: {}]   ;;  %s2725_s10 = inlined_call_operand.hbm [shape: f32[2,8,32], index: 10, kind: output, shape index: {}]  }
   0x1   :  { %2747 = sst [smem:[#allocation31_spill]] %s2716_s1 }
   0x2   :  { %2748 = sst [smem:[#allocation32_spill]] %s2719_s4 }
   0x3   :  { %2749 = sst [smem:[#allocation33_spill]] %s2721_s6 }
   0x4   :  { %2750 = sst [smem:[#allocation34_spill]] %s2723_s8 }
   0x5   :  { %2751 = sst [smem:[#allocation35_spill]] %s2724_s9 }
   0x6   :  { %2752 = sst [smem:[#allocation36_spill]] %s2725_s10 }
   0x7   :  { %15 = vsyncpa [#allocation6], 0 }
   0x8   :  { %17 = vsyncpa [#allocation6 + $0x1], 0 }
   0x9   :  { %18 = vsyncpa [#allocation9], 0 }
   0xa   :  { %20 = vsyncpa [#allocation9 + $0x1], 0 }
   0xb   :  { %21 = vsyncpa [#allocation12], 0 }
   0xc   :  { %23 = vsyncpa [#allocation12 + $0x1], 0 }
   0xd   :  { %24 = vsyncpa [#allocation15], 0 }
   0xe   :  { %25 = vsyncpa [#allocation7], 0 }
   0xf   :  { %27 = vsyncpa [#allocation7 + $0x1], 0  ;;  %s2209_s13 = smov 0   ;;  %s2211_s14 = smov 0  }
  0x10   :  { %s2213_s15 = smov 0   ;;  %s2215_s16 = smov 0  }
  0x11   :  { %s2217_s17 = smov 0   ;;  %s2219_s18 = smov 0  }
  0x12 LB: > { %2753 = sst [smem:[#allocation24_spill]] %s2113_s13  ;;  %s2240_s19 = sadd.s32 4294967295, %s2133_s18   ;;  %s2133_s18 = sphi %s2219_s18, %s33_s18   ;;  %s2129_s17 = sphi %s2217_s17, %s2806_s17   ;;  %s2125_s16 = sphi %s2215_s16, %s2805_s16   ;;  %s2121_s15 = sphi %s2213_s15, %s2801_s15   ;;  %s2117_s14 = sphi %s2211_s14, %s2804_s14   ;;  %s2113_s13 = sphi %s2209_s13, %s2803_s13  }
  0x13   : > { %2754 = sst [smem:[#allocation25_spill]] %s2121_s15  ;;  %s1517_s20 = sadd.s32 4294967294, %s2133_s18  }
  0x14   : > { %2755 = sst [smem:[#allocation26_spill]] %s2125_s16  ;;  %p67_p0 = scmp.ne.s32.totalorder %s2117_s14, %s2113_s13 }
  0x15   : > { %p2727_p1 = scmp.eq.s32.totalorder %s2240_s19, 0  ;;  %p305_p3 = scmp.eq.s32.totalorder %s1517_s20, 1 }
  0x16   : > { %p1518_p5 = scmp.ge.s32.totalorder %s2133_s18, 1  ;;  %p312_p7 = scmp.lt.s32.totalorder %s2133_s18, 3 }
  0x17   : > { %p2249_p4 = por %p2727_p1, %p67_p0  ;;  %p2254_p6 = por %p305_p3, %p67_p0 }
  0x18   : > { %p2259_p8 = pnand %p1518_p5, %p312_p7  ;;  %s2135_s24 = smov [#allocation13]  }
  0x19   : > { %s2756_s21 = scalar_select %p2249_p4, 1, 0 }
  0x1a   : > { %s2757_s22 = scalar_select %p2254_p6, 1, 0 }
  0x1b   : > { %s2759_s23 = scalar_select %p2259_p8, 1, 0 }
  0x1c   : > { %2758 = sst [smem:[#allocation27_spill]] %s2757_s22  ;;  %s324_s25 = sshll.u32 %s2135_s24, 4  ;;  %s2263_s25 = int_to_ptr.vmem [resolvable:$true] %s324_s25 }
  0x1d   : > { %p1702_p9 = pneg %p2259_p8  ;;  %s2136_s27 = smov [#allocation14]  }
  0x1e   : > { %s340_s28 = sshll.u32 %s2136_s27, 4  ;;  %s2761_s4 = sld [smem:[#allocation32_spill]]  ;;  %s2274_s28 = int_to_ptr.vmem [resolvable:$true] %s340_s28 }
  0x1f   : > { %p2270_p11 = pnand %p1702_p9, %p2727_p1 }
  0x21   : > { %s2760_s26 = scalar_select %p2270_p11, 1, 0 }
  0x22   : > { %p2284_p13 = pneg %p2270_p11 }
  0x24   : > { %s1831_s11 = scalar_lea.hbm %s2761_s4, 256 }
  0x25   : > { %p1832_p12 = scmp.ne.s32.totalorder %s2761_s4, %s1831_s11  ;;  %p1838_p5 = scmp.lt.u32.totalorder %s1831_s11, %s2761_s4 }
  0x26   : > { %s2762_s24 = scalar_select %p2284_p13, 1, 0 }
  0x27   : > { %p1834_p0 = pnand %p2284_p13, %p1832_p12 }
  0x29   : > { %p1835_p3 = pneg %p1834_p0 }
  0x2b   : > { %p1840_p7 = pnand %p1838_p5, %p1835_p3 }
  0x2d   : > { %1843 = shalt.err (!%p1840_p7)
}
  0x2e   : > { %s1844_s29 = scalar_lea.vmem %s2263_s25, 256  ;;  %p1852_p2 = scmp.lt.s32.totalorder %s2263_s25, %s2263_s25 }
  0x2f   : > { %p1845_p9 = scmp.ne.s32.totalorder %s2263_s25, %s1844_s29  ;;  %p1853_p6 = scmp.lt.s32.totalorder %s1844_s29, %s1844_s29 }
  0x31   : > { %p1847_p10 = pnand %p1845_p9, %p2284_p13  ;;  %p1854_p12 = por %p1853_p6, %p1852_p2 }
  0x33   : > { %p1848_p1 = pneg %p1847_p10 }
  0x35   : > { %p1855_p0 = pnand %p1854_p12, %p1848_p1 }
  0x37   : > { %1858 = shalt.err (!%p1855_p0)
}
  0x38   : > { %s2730_s30 = smov 64   ;;  %s2731_s22 = smov 4  }
  0x39   : > { %1705 = dma.hbm_to_vmem [thread:$0]  (!%p2270_p11), %s2761_s4, 256, %s2263_s25, [#allocation12], %s2730_s30, %s2730_s30, %s2731_s22  }
  0x3a   : > { %s2763_s6 = sld [smem:[#allocation33_spill]] }
  0x40   : > { %s1859_s29 = scalar_lea.hbm %s2763_s6, 256 }
  0x41   : > { %p1860_p1 = scmp.ne.s32.totalorder %s2763_s6, %s1859_s29  ;;  %p1866_p10 = scmp.lt.u32.totalorder %s1859_s29, %s2763_s6 }
  0x43   : > { %p1862_p2 = pnand %p1860_p1, %p2284_p13 }
  0x45   : > { %p1863_p6 = pneg %p1862_p2 }
  0x47   : > { %p1868_p3 = pnand %p1866_p10, %p1863_p6 }
  0x49   : > { %1871 = shalt.err (!%p1868_p3)
}
  0x4a   : > { %s1872_s25 = scalar_lea.vmem %s2274_s28, 256  ;;  %p1880_p12 = scmp.lt.s32.totalorder %s2274_s28, %s2274_s28 }
  0x4b   : > { %p1873_p5 = scmp.ne.s32.totalorder %s2274_s28, %s1872_s25  ;;  %p1881_p0 = scmp.lt.s32.totalorder %s1872_s25, %s1872_s25 }
  0x4d   : > { %p1875_p7 = pnand %p1873_p5, %p2284_p13  ;;  %p1882_p1 = por %p1881_p0, %p1880_p12 }
  0x4f   : > { %p1876_p9 = pneg %p1875_p7 }
  0x51   : > { %p1883_p2 = pnand %p1882_p1, %p1876_p9 }
  0x53   : > { %1886 = shalt.err (!%p1883_p2)
}
  0x54   : > { %1708 = dma.hbm_to_vmem [thread:$0]  (!%p2270_p11), %s2763_s6, 256, %s2274_s28, [#allocation15], %s2730_s30, %s2730_s30, %s2731_s22  }
  0x55   : > { %s45_s10 = sadd.s32 1, %s2129_s17  ;;  %s54_s13 = sadd.s32 1, %s2121_s15 }
  0x56   : > { %p47_p6 = scmp.ge.s32.totalorder %s45_s10, 2  ;;  %p61_p10 = scmp.ne.s32.totalorder %s2121_s15, %s2117_s14 }
  0x57   : > { %p62_p3 = scmp.eq.s32.totalorder %s2133_s18, 0  ;;  %p1732_p5 = scmp.lt.s32.totalorder %s2133_s18, 2 }
  0x58   : > { %s2808_s10 = smov (%p47_p6, %s45_s10), 0  ;;  %p2765_p9 = scmp.eq.s32.totalorder %s2240_s19, 1 }
  0x59   : > { %2764 = sst [smem:[#allocation28_spill]] %s2808_s10  ;;  %p63_p7 = por %p62_p3, %p61_p10 }
  0x5a   : > { %p2344_p12 = por %p2765_p9, %p61_p10  ;;  %s49_s28 = ssub.s32 %s2129_s17, %s2808_s10 }
  0x5b   : > { %s2351_s12 = sand.u32 1, %s2121_s15   ;;  %p52_p0 = scmp.eq.s32.totalorder %s49_s28, 0 }
  0x5c   : > { %s2766_s11 = scalar_select %p2344_p12, 1, 0 }
  0x5d   : > { %p2353_p1 = pnand %p1732_p5, %p63_p7  ;;  %s2737_s27 = sand.u32 1, %s2133_s18  }
  0x5e   : > { %2767 = sst [smem:[#allocation29_spill]] %s2766_s11  ;;  %s2733_s29 = sshll.u32 %s2351_s12, 2 }
  0x5f   : > { %s2768_s20 = scalar_select %p2353_p1, 1, 0 }
  0x60   : > { %s2360_s25 = scalar_select %p52_p0, %s2121_s15, %s54_s13  }
  0x61   : > { %s2734_s8 = sshll.u32 %s2129_s17, 6  ;;  %s2770_s1 = sld [smem:[#allocation31_spill]] }
  0x62   : > { %2769 = sst [smem:[#allocation30_spill]] %s2360_s25  ;;  %s396_s28 = scalar_lea.vmem [#allocation8], %s2733_s29 }
  0x63   : > { %s403_s4 = sshll.u32 %s396_s28, 4  ;;  %s2376_s6 = scalar_lea.sflag [#allocation9], %s2737_s27  ;;  %s2372_s4 = int_to_ptr.vmem [resolvable:$true] %s403_s4 }
  0x64   : > { %p2382_p6 = pneg %p2353_p1 }
  0x67   : > { %s2368_s22 = scalar_lea.hbm %s2770_s1, %s2734_s8  ;;  %s1892_s28 = scalar_lea.hbm %s2770_s1, 128 }
  0x68   : > { %s1887_s13 = scalar_lea.hbm %s2368_s22, 64  ;;  %p1893_p5 = scmp.lt.u32.totalorder %s2368_s22, %s2770_s1 }
  0x69   : > { %p1888_p2 = scmp.ne.s32.totalorder %s2368_s22, %s1887_s13  ;;  %p1894_p7 = scmp.lt.u32.totalorder %s1892_s28, %s1887_s13 }
  0x6a   : > { %p1896_p0 = scmp.lt.u32.totalorder %s1887_s13, %s2368_s22 }
  0x6b   : > { %p1890_p10 = pnand %p2382_p6, %p1888_p2  ;;  %p1895_p9 = por %p1894_p7, %p1893_p5 }
  0x6d   : > { %p1891_p3 = pneg %p1890_p10  ;;  %p1897_p12 = por %p1896_p0, %p1895_p9 }
  0x6f   : > { %p1898_p4 = pnand %p1897_p12, %p1891_p3 }
  0x71   : > { %1901 = shalt.err (!%p1898_p4)
}
  0x72   : > { %s1902_s27 = scalar_lea.vmem %s2372_s4, 64  ;;  %s2139_s30 = smov [#allocation8]  }
  0x73   : > { %p1903_p2 = scmp.ne.s32.totalorder %s2372_s4, %s1902_s27  ;;  %s1907_s9 = sshll.u32 %s2139_s30, 4  ;;  %s1908_s9 = int_to_ptr.vmem [resolvable:$false] %s1907_s9 }
  0x74   : > { %s1909_s29 = scalar_lea.vmem %s1908_s9, 128  ;;  %p1910_p11 = scmp.lt.s32.totalorder %s2372_s4, %s1908_s9 }
  0x75   : > { %p1905_p10 = pnand %p1903_p2, %p2382_p6  ;;  %p1911_p13 = scmp.lt.s32.totalorder %s1909_s29, %s1902_s27 }
  0x77   : > { %p1906_p8 = pneg %p1905_p10  ;;  %p1912_p5 = por %p1911_p13, %p1910_p11 }
  0x79   : > { %p1913_p7 = pnand %p1912_p5, %p1906_p8 }
  0x7b   : > { %1916 = shalt.err (!%p1913_p7)
}
  0x7c   : > { %1718 = dma.hbm_to_vmem [thread:$0]  (!%p2353_p1), %s2368_s22, 64, %s2372_s4, %s2376_s6  }
  0x7d   : > { %s2772_s8 = sshll.u32 %s2129_s17, 6  ;;  %s2140_s9 = smov [#allocation16]  }
  0x7e   : > { %s2411_s30 = scalar_lea.hbm %s2717_s2, %s2772_s8  ;;  %s353_s27 = sshll.u32 %s2140_s9, 4  ;;  %s354_s27 = int_to_ptr.vmem [resolvable:$true] %s353_s27 }
  0x7f   : > { %s1523_s29 = sshll.u32 %s2351_s12, 3  ;;  %s1917_s15 = scalar_lea.hbm %s2722_s7, 256 }
  0x80   : > { %p1918_p4 = scmp.ne.s32.totalorder %s2722_s7, %s1917_s15  ;;  %p2773_p8 = scmp.ne.s32.totalorder %s2762_s24, 0 }
  0x81   : > { %p1924_p12 = scmp.lt.u32.totalorder %s1917_s15, %s2722_s7 }
  0x82   : > { %p1920_p11 = pnand %p1918_p4, %p2773_p8 }
  0x84   : > { %p1921_p13 = pneg %p1920_p11 }
  0x86   : > { %p1926_p3 = pnand %p1924_p12, %p1921_p13 }
  0x88   : > { %1929 = shalt.err (!%p1926_p3)
}
  0x89   : > { %s1930_s8 = scalar_lea.vmem %s354_s27, 256  ;;  %p1938_p10 = scmp.lt.s32.totalorder %s354_s27, %s354_s27 }
  0x8a   : > { %p1931_p9 = scmp.ne.s32.totalorder %s354_s27, %s1930_s8  ;;  %p1939_p5 = scmp.lt.s32.totalorder %s1930_s8, %s1930_s8 }
  0x8c   : > { %p1933_p0 = pnand %p1931_p9, %p2773_p8  ;;  %p1940_p7 = por %p1939_p5, %p1938_p10 }
  0x8e   : > { %p1934_p2 = pneg %p1933_p0 }
  0x90   : > { %p1941_p1 = pnand %p1940_p7, %p1934_p2 }
  0x92   : > { %1944 = shalt.err (!%p1941_p1)
}
  0x93   : > { %p2774_p4 = scmp.ne.s32.totalorder %s2760_s26, 0  ;;  %s2775_s1 = smov 4  }
  0x94   : > { %s2776_s16 = smov 64   ;;  %s1524_s24 = sshll.u32 %s2129_s17, 7 }
  0x95   : > { %1711 = dma.hbm_to_vmem [thread:$0]  (!%p2774_p4), %s2722_s7, 256, %s354_s27, [#allocation15], %s2776_s16, %s2776_s16, %s2775_s1  }
  0x96   : > { %s377_s25 = scalar_lea.vmem [#allocation5], %s1523_s29  ;;  %s2439_s4 = scalar_lea.hbm %s2715_s0, %s1524_s24 }
  0x97   : > { %s385_s13 = sshll.u32 %s377_s25, 4  ;;  %s374_s26 = scalar_lea.sflag [#allocation6], %s2351_s12  ;;  %s386_s13 = int_to_ptr.vmem [resolvable:$true] %s385_s13 }
  0x98   : > { %s1945_s22 = scalar_lea.hbm %s2439_s4, 128  ;;  %s1950_s29 = scalar_lea.hbm %s2715_s0, 256 }
  0x99   : > { %p1946_p1 = scmp.ne.s32.totalorder %s2439_s4, %s1945_s22  ;;  %p1951_p13 = scmp.lt.u32.totalorder %s2439_s4, %s2715_s0 }
  0x9a   : > { %p1952_p12 = scmp.lt.u32.totalorder %s1950_s29, %s1945_s22  ;;  %p1954_p9 = scmp.lt.u32.totalorder %s1945_s22, %s2439_s4 }
  0x9b   : > { %p1948_p8 = pnand %p1946_p1, %p2382_p6 }
  0x9c   : > { %p1953_p3 = por %p1952_p12, %p1951_p13 }
  0x9d   : > { %p1949_p11 = pneg %p1948_p8 }
  0x9e   : > { %p1955_p0 = por %p1954_p9, %p1953_p3 }
  0xa0   : > { %p1956_p2 = pnand %p1955_p0, %p1949_p11 }
  0xa2   : > { %1959 = shalt.err (!%p1956_p2)
}
  0xa3   : > { %s1960_s11 = scalar_lea.vmem %s386_s13, 128  ;;  %s2141_s15 = smov [#allocation5]  }
  0xa4   : > { %p1961_p10 = scmp.ne.s32.totalorder %s386_s13, %s1960_s11  ;;  %s1965_s24 = sshll.u32 %s2141_s15, 4  ;;  %s1966_s24 = int_to_ptr.vmem [resolvable:$false] %s1965_s24 }
  0xa5   : > { %s1967_s25 = scalar_lea.vmem %s1966_s24, 256  ;;  %p1968_p4 = scmp.lt.s32.totalorder %s386_s13, %s1966_s24 }
  0xa6   : > { %p1963_p5 = pnand %p1961_p10, %p2382_p6  ;;  %p1969_p1 = scmp.lt.s32.totalorder %s1967_s25, %s1960_s11 }
  0xa8   : > { %p1964_p7 = pneg %p1963_p5  ;;  %p1970_p8 = por %p1969_p1, %p1968_p4 }
  0xaa   : > { %p1971_p12 = pnand %p1970_p8, %p1964_p7 }
  0xac   : > { %1974 = shalt.err (!%p1971_p12)
}
  0xad   : > { %p2777_p13 = scmp.ne.s32.totalorder %s2768_s20, 0  ;;  %s2778_s28 = sshll.u32 %s2351_s12, 2 }
  0xae   : > { %s414_s9 = scalar_lea.vmem [#allocation10], %s2778_s28  ;;  %s1529_s27 = sshll.u32 %s2351_s12, 1 }
  0xaf   : > { %1715 = dma.hbm_to_vmem [thread:$0]  (!%p2777_p13), %s2439_s4, 128, %s386_s13, %s374_s26  }
  0xb0   : > { %s421_s22 = sshll.u32 %s414_s9, 4  ;;  %s1975_s8 = scalar_lea.hbm %s2411_s30, 64  ;;  %s422_s22 = int_to_ptr.vmem [resolvable:$true] %s421_s22 }
  0xb1   : > { %p1976_p11 = scmp.ne.s32.totalorder %s2411_s30, %s1975_s8  ;;  %s1980_s16 = scalar_lea.hbm %s2717_s2, 128 }
  0xb2   : > { %p1981_p0 = scmp.lt.u32.totalorder %s2411_s30, %s2717_s2  ;;  %p1982_p2 = scmp.lt.u32.totalorder %s1980_s16, %s1975_s8 }
  0xb3   : > { %p1978_p3 = pnand %p1976_p11, %p2382_p6  ;;  %p1984_p5 = scmp.lt.u32.totalorder %s1975_s8, %s2411_s30 }
  0xb4   : > { %p1983_p10 = por %p1982_p2, %p1981_p0 }
  0xb5   : > { %p1979_p9 = pneg %p1978_p3 }
  0xb6   : > { %p1985_p7 = por %p1984_p5, %p1983_p10 }
  0xb8   : > { %p1986_p4 = pnand %p1985_p7, %p1979_p9 }
  0xba   : > { %1989 = shalt.err (!%p1986_p4)
}
  0xbb   : > { %s1990_s13 = scalar_lea.vmem %s422_s22, 64  ;;  %s2142_s4 = smov [#allocation10]  }
  0xbc   : > { %p1991_p1 = scmp.ne.s32.totalorder %s422_s22, %s1990_s13  ;;  %s1995_s26 = sshll.u32 %s2142_s4, 4  ;;  %s1996_s26 = int_to_ptr.vmem [resolvable:$false] %s1995_s26 }
  0xbd   : > { %s1997_s24 = scalar_lea.vmem %s1996_s26, 128  ;;  %p1998_p11 = scmp.lt.s32.totalorder %s422_s22, %s1996_s26 }
  0xbe   : > { %p1993_p8 = pnand %p1991_p1, %p2382_p6  ;;  %p1999_p3 = scmp.lt.s32.totalorder %s1997_s24, %s1990_s13 }
  0xc0   : > { %p1994_p12 = pneg %p1993_p8  ;;  %p2000_p13 = por %p1999_p3, %p1998_p11 }
  0xc2   : > { %p2001_p0 = pnand %p2000_p13, %p1994_p12 }
  0xc4   : > { %2004 = shalt.err (!%p2001_p0)
}
  0xc5   : > { %p2779_p2 = scmp.ne.s32.totalorder %s2768_s20, 0  ;;  %s1530_s25 = sshll.u32 %s2129_s17, 5 }
  0xc6   : > { %s432_s28 = scalar_lea.vmem [#allocation11], %s1529_s27  ;;  %s2486_s1 = scalar_lea.hbm %s2718_s3, %s1530_s25 }
  0xc7   : > { %1721 = dma.hbm_to_vmem [thread:$0]  (!%p2779_p2), %s2411_s30, 64, %s422_s22, %s2376_s6  }
  0xc8   : > { %s440_s9 = sshll.u32 %s432_s28, 4  ;;  %s2780_s16 = sand.u32 1, %s2133_s18   ;;  %s441_s9 = int_to_ptr.vmem [resolvable:$true] %s440_s9 }
  0xc9   : > { %s429_s11 = scalar_lea.sflag [#allocation12], %s2780_s16  ;;  %s2005_s15 = scalar_lea.hbm %s2486_s1, 32 }
  0xca   : > { %p2006_p13 = scmp.ne.s32.totalorder %s2486_s1, %s2005_s15  ;;  %s2010_s30 = scalar_lea.hbm %s2718_s3, 64 }
  0xcb   : > { %p2011_p5 = scmp.lt.u32.totalorder %s2486_s1, %s2718_s3  ;;  %p2012_p7 = scmp.lt.u32.totalorder %s2010_s30, %s2005_s15 }
  0xcc   : > { %p2008_p9 = pnand %p2006_p13, %p2382_p6  ;;  %p2014_p1 = scmp.lt.u32.totalorder %s2005_s15, %s2486_s1 }
  0xcd   : > { %p2013_p4 = por %p2012_p7, %p2011_p5 }
  0xce   : > { %p2009_p10 = pneg %p2008_p9 }
  0xcf   : > { %p2015_p8 = por %p2014_p1, %p2013_p4 }
  0xd1   : > { %p2016_p12 = pnand %p2015_p8, %p2009_p10 }
  0xd3   : > { %2019 = shalt.err (!%p2016_p12)
}
  0xd4   : > { %s2020_s13 = scalar_lea.vmem %s441_s9, 32  ;;  %s2143_s4 = smov [#allocation11]  }
  0xd5   : > { %p2021_p11 = scmp.ne.s32.totalorder %s441_s9, %s2020_s13  ;;  %s2025_s26 = sshll.u32 %s2143_s4, 4  ;;  %s2026_s26 = int_to_ptr.vmem [resolvable:$false] %s2025_s26 }
  0xd6   : > { %s2027_s24 = scalar_lea.vmem %s2026_s26, 64  ;;  %p2028_p13 = scmp.lt.s32.totalorder %s441_s9, %s2026_s26 }
  0xd7   : > { %p2023_p3 = pnand %p2021_p11, %p2382_p6  ;;  %p2029_p9 = scmp.lt.s32.totalorder %s2027_s24, %s2020_s13 }
  0xd9   : > { %p2024_p0 = pneg %p2023_p3  ;;  %p2030_p2 = por %p2029_p9, %p2028_p13 }
  0xdb   : > { %p2031_p5 = pnand %p2030_p2, %p2024_p0 }
  0xdd   : > { %2034 = shalt.err (!%p2031_p5)
}
  0xde   : > { %p2781_p7 = scmp.ne.s32.totalorder %s2768_s20, 0  ;;  %p2782_p10 = scmp.ne.s32.totalorder %s2759_s23, 0 }
  0xdf   : > { %s2510_s10 = sand.u32 (!%p2782_p10), 1, %s2117_s14   ;;  %p2783_p6 = scmp.ne.s32.totalorder (!%p2782_p10), %s2756_s21, 0 }
  0xe0   : > { %1724 = dma.hbm_to_vmem [thread:$0]  (!%p2781_p7), %s2486_s1, 32, %s441_s9, %s429_s11  }
  0xe1   : > { %449 = sbr.rel (%p2782_p10) target bundleno = 1871 (0x74f), region = 60  ;;  %s1532_s25 = sshll.u32 (!%p2782_p10), %s2510_s10, 3 }
  0xe2   : > { %s452_s28 = scalar_lea.sflag (!%p2782_p10), [#allocation6], %s2510_s10  ;;  %s2516_s8 = scalar_lea.vmem (!%p2782_p10), [#allocation5], %s1532_s25 }
  0xe8   : > { %2088 = dma.done.wait (%p2783_p6), %s452_s28, 128  }
  0xe9   : > { %2090 = vsyncadd (%p2783_p6), %s452_s28, 4294967168  ;;  %s460_s23 = sand.u32 1, %s2240_s19   ;;  %s1533_s20 = sshll.u32 %s2510_s10, 2 }
  0xea   : > { %s461_s9 = scalar_lea.sflag [#allocation9], %s460_s23  ;;  %s464_s29 = scalar_lea.vmem [#allocation8], %s1533_s20 }
  0xeb   : > { %2092 = dma.done.wait (%p2783_p6), %s461_s9, 128  }
  0xec   : > { %2094 = vsyncadd (%p2783_p6), %s461_s9, 4294967168  ;;  %s1535_s1 = sshll.u32 %s2510_s10, 1  ;;  %s2529_s16 = scalar_lea.vmem [#allocation10], %s1533_s20 }
  0xed   : > { %s479_s11 = scalar_lea.sflag [#allocation12], %s460_s23  ;;  %s2531_s15 = scalar_lea.vmem [#allocation11], %s1535_s1 }
  0xee   : > { %2096 = dma.done.wait (%p2783_p6), %s479_s11, 32  }
  0xef   : > { %2098 = vsyncadd (%p2783_p6), %s479_s11, 4294967264  ;;  %p2784_p2 = scmp.eq.s32.totalorder %s2240_s19, 0 }
  0xf1   : > { %2100 = dma.done.wait (%p2784_p2), [#allocation12], 256   ;;  %p2785_p4 = pmov %p2784_p2 }
  0xf2   : > { %p2786_p1 = pmov %p2784_p2 }
  0xf3   : > { %2102 = vsyncadd (%p2785_p4), [#allocation12], 4294967040 }
  0xf4   : > { %2104 = dma.done.wait (%p2786_p1), [#allocation15], 512   ;;  %p2787_p8 = pmov %p2786_p1 }
  0xf5   : > { %v2144_v0 = vmov 0.0   ;;  %vm2145_vm0 = vmmov 0   ;;  %v1799_v1 = vld [vmem:[%s2720_s5] sm:$0xff]   ;;  %v1800_v2 = vld [vmem:[%s2720_s5 + $0x8] sm:$0xff]   ;;  %v1801_v4 = vld [vmem:[#allocation13] sm:$0xff]   ;;  %vm572_vm1 = vcmask 261120  }
  0xf6   : > { %2106 = vsyncadd (%p2787_p8), [#allocation15], 4294966784  ;;  %1600 = vmatprep.subr.bf16.mxu0 %v2144_v0  ;;  %1604 = vmatprep.mubr.msk.bf16.mxu0 %vm2145_vm0, %v2144_v0  ;;  %v555_v3 = vld [vmem:[%s464_s29] sm:$0xf]  ;;  %v2564_v7 = vld [vmem:[%s2516_s8] sm:$0xff]  ;;  %vm617_vm2 = vcmask 257024  }
  0xf7   : > { %1608 = vmatprep.subr.bf16.mxu1 %v2144_v0  ;;  %1612 = vmatprep.mubr.msk.bf16.mxu1 %vm2145_vm0, %v2144_v0  ;;  %v1803_v5 = vld [vmem:[#allocation14] sm:$0xff]   ;;  %v1802_v6 = vld [vmem:[#allocation13 + $0x8] sm:$0xff]   ;;  %v550_v8 = vpack.c.bf16 %v2564_v7, %v2564_v7  ;;  %v1804_v9 = vld [vmem:[#allocation14 + $0x8] sm:$0xff]   ;;  %vm746_vm3 = vcmask 64512   ;;  %s2146_s30 = smov 112   ;;  %s2147_s22 = smov 120  }
  0xf8   : > { %1601 = vmatpush3.bf16.msra.mxu0 %v1799_v1  ;;  %1609 = vmatpush3.bf16.msra.mxu1 %v1803_v5  ;;  %v619_v10 = vld [vmem:[%s2529_s16] sm:$0xf]  ;;  %s2148_s27 = smov 104   ;;  %vm811_vm4 = vcmask 1043456   ;;  %v742_v42 = vld [vmem:[%s2531_s15] sm:$0x3] }
  0xf9   : > { %1602 = vmatprep.subr.bf16.mxu0 %v2144_v0  ;;  %1610 = vmatprep.subr.bf16.mxu1 %v2144_v0  ;;  %vm743_vm5 = vnez %v742_v42  ;;  %v2149_v43 = vmov 0   ;;  %s2150_s13 = smov 8   ;;  %s2151_s4 = smov 16   ;;  %vm981_vm7 = vcmask 130112   ;;  %vm1106_vm8 = vcmask 195712  }
  0xfa   : > { %v793_v44 = vsel %vm743_vm5, 16843009, %v2149_v43  ;;  %s2152_s26 = smov 24   ;;  %vm1231_vm9 = vcmask 261312   ;;  %s2790_s24 = sld [smem:[#allocation26_spill]] }
  0xfb   : > { %v794_v45 = vunpack.c.0.s8 %v793_v44  ;;  %s2791_s28 = sld [smem:[#allocation29_spill]]  ;;  %s2792_s20 = sld [smem:[#allocation34_spill]] }
  0xfc   : > { %1603 = vmatpush3.bf16.msra.mxu0 %v1800_v2  ;;  %1611 = vmatpush3.bf16.msra.mxu1 %v1804_v9  ;;  %s2793_s1 = sld [smem:[#allocation35_spill]]  ;;  %s545_s11 = scalar_lea.vmem [#allocation17], %s1532_s25 }
  0xfd   : > { %1616 = vmatprep.subr.bf16.mxu0 %v2144_v0  ;;  %1624 = vmatprep.subr.bf16.mxu1 %v2144_v0  ;;  %vm2609_vm6 = vcmp.ne.s32.totalorder %v794_v45, 0  ;;  %s1341_s15 = sshll.u32 %s545_s11, 4  ;;  %s2794_s19 = sld [smem:[#allocation36_spill]]  ;;  %s2667_s15 = int_to_ptr.vmem [resolvable:$true] %s1341_s15 }
  0xfe   : > { %s2153_s25 = smov [#allocation17]  }
  0xff   : > { %1605 = vmatmul.mubr.msk.bf16.vlgmr.msra.gmra.mrb[0].mxu0 %vm572_vm1, %v555_v3  ;;  %1613 = vmatmul.mubr.msk.bf16.vlgmr.msra.gmra.mrb[0].mxu1 %vm572_vm1, %v619_v10 }
 0x100   : > { %1617 = vmatpush3.bf16.msra.mxu0 %v1801_v4  ;;  %1620 = vmatprep.mubr.msk.bf16.mxu0 %vm2145_vm0, %v2144_v0  ;;  %s1569_s16 = sshll.u32 %s2790_s24, 7 }
 0x101   : > { %1618 = vmatprep.subr.bf16.mxu0 %v2144_v0  ;;  %1626 = vmatprep.mubr.msk.bf16.mxu1 %vm2145_vm0, %v2144_v0  ;;  %p2795_p11 = scmp.ne.s32.totalorder %s2791_s28, 0 }
 0x103   : > { %s2665_s12 = scalar_lea.hbm %s2794_s19, %s1569_s16 }
 0x104   : > { %1619 = vmatpush3.bf16.msra.mxu0 %v1802_v6 }
 0x105   : > { %1630 = vmatprep.subr.bf16.mxu0 %v2144_v0 }
 0x107   : > { %1621 = vmatmul.mubr.msk.bf16.vlgmr.msra.gmra.mrb[4].mxu0 %vm572_vm1, %v550_v8 }
 0x108   : > { %1632 = vmatprep.mubr.msk.bf16.mxu0 %vm2145_vm0, %v2144_v0 }
 0x1d2   : > { %v610_v11 = vpop.f32.mrb[0].mxu0  ;;  %v673_v26 = vpop.f32.mrb[0].mxu1 }
 0x1d3   : > { %v616_v12 = vpack.c.bf16 %v610_v11, %v610_v11  ;;  %v1606_v13 = vpop.f32.mrb[1].mxu0  ;;  %v679_v27 = vpack.c.bf16 %v673_v26, %v673_v26  ;;  %v1614_v28 = vpop.f32.mrb[1].mxu1 }
 0x1d4   : > { %v613_v14 = vpop.f32.mrb[2].mxu0  ;;  %v676_v29 = vpop.f32.mrb[2].mxu1 }
 0x1d5   : > { %618 = vst.msk [vmem:[#allocation2] sm:$0xf] %vm617_vm2, %v616_v12  ;;  %v1607_v15 = vpop.f32.mrb[3].mxu0  ;;  %680 = vst.msk [vmem:[#allocation3] sm:$0xf] %vm617_vm2, %v679_v27  ;;  %v1615_v30 = vpop.f32.mrb[3].mxu1 }
 0x1da   : > { %v735_v16 = vpop.f32.mrb[4].mxu0 }
 0x1db   : > { %v1622_v17 = vpop.f32.mrb[5].mxu0  ;;  %v741_v23 = vpack.c.bf16 %v735_v16, %v735_v16 }
 0x1dc   : > { %v744_v18 = vld [vmem:[#allocation2] sm:$0xf]  ;;  %v738_v22 = vpop.f32.mrb[6].mxu0  ;;  %v745_v31 = vld [vmem:[#allocation3] sm:$0xf] }
 0x1dd   : > { %v1805_v19 = vld [vmem:[#allocation2] ss:$0 sps:$4 sm:$0xff]   ;;  %v751_v20 = vsel %vm746_vm3, %v744_v18, 0  ;;  %v1623_v24 = vpop.f32.mrb[7].mxu0  ;;  %v813_v32 = vsel %vm811_vm4, %v745_v31, 0 }
 0x1de   : > { %v1806_v21 = vld [vmem:[#allocation2] ss:$0 sps:$4 sm:$0xff]   ;;  %1625 = vmatpush3.bf16.xpose.msra.mxu1 %v751_v20  ;;  %990 = vrot.lane.b32.xlu1 %v1805_v19, %s2146_s30  ;;  %v1808_v8 = vld [vmem:[#allocation3] ss:$0 sps:$4 sm:$0xff]  }
 0x1df   : > { %865 = vrot.lane.b32.xlu0 %v1806_v21, %s2147_s22  ;;  %1636 = vmatprep.subr.bf16.mxu1 %v2144_v0  ;;  %v1807_v25 = vld [vmem:[#allocation2] ss:$0 sps:$4 sm:$0xff]   ;;  %v1809_v10 = vld [vmem:[#allocation3] ss:$0 sps:$4 sm:$0xff]  }
 0x1e0   : > { %1631 = vmatpush3.bf16.msra.mxu0 %v813_v32  ;;  %v1810_v14 = vld [vmem:[#allocation3] ss:$0 sps:$4 sm:$0xff]  }
 0x1e1   : > { %1642 = vmatprep.subr.bf16.mxu0 %v2144_v0 }
 0x1e2   : > { %985 = vrot.lane.b32.xlu1 %v741_v23, %s2146_s30 }
 0x1e3   : > { %860 = vrot.lane.b32.xlu0 %v741_v23, %s2147_s22 }
 0x1e5   : > { %1627 = vmatmul.mubr.msk.bf16.vlgmr.msra.gmra.mrb[4].mxu1 %vm746_vm3, %v741_v23 }
 0x1e6   : > { %1110 = vrot.lane.b32.xlu1 %v741_v23, %s2148_s27  ;;  %1638 = vmatprep.mubr.msk.bf16.mxu1 %vm2145_vm0, %v2144_v0 }
 0x1e7   : > { %1115 = vrot.lane.b32.xlu0 %v1807_v25, %s2148_s27 }
 0x250   : > { %v991_v35 = vpop.permute.xlu1 %990 }
 0x251   : > { %v866_v33 = vpop.permute.xlu0 %865  ;;  %v996_v37 = vsel %vm746_vm3, %v991_v35, 0 }
 0x252   : > { %v871_v34 = vsel %vm746_vm3, %v866_v33, 0 }
 0x253   : > { %1637 = vmatpush3.bf16.xpose.msra.mxu1 %v871_v34 }
 0x254   : > { %1648 = vmatprep.subr.bf16.mxu1 %v2144_v0  ;;  %v986_v39 = vpop.permute.xlu1 %985 }
 0x255   : > { %v861_v36 = vpop.permute.xlu0 %860 }
 0x258   : > { %v1111_v41 = vpop.permute.xlu1 %1110 }
 0x259   : > { %v1116_v38 = vpop.permute.xlu0 %1115 }
 0x25a   : > { %1639 = vmatmul.mubr.msk.bf16.vlgmr.msra.gmra.mrb[8].mxu1 %vm746_vm3, %v861_v36  ;;  %v1121_v40 = vsel %vm746_vm3, %v1116_v38, 0 }
 0x25b   : > { %1649 = vmatpush3.bf16.xpose.msra.mxu1 %v996_v37  ;;  %1650 = vmatprep.mubr.msk.bf16.mxu1 %vm2145_vm0, %v2144_v0 }
 0x25c   : > { %1660 = vmatprep.subr.bf16.mxu1 %v2144_v0 }
 0x262   : > { %1651 = vmatmul.mubr.msk.bf16.vlgmr.msra.gmra.mrb[12].mxu1 %vm746_vm3, %v986_v39 }
 0x263   : > { %1661 = vmatpush3.bf16.xpose.msra.mxu1 %v1121_v40  ;;  %1662 = vmatprep.mubr.msk.bf16.mxu1 %vm2145_vm0, %v2144_v0 }
 0x264   : > { %1672 = vmatprep.subr.bf16.mxu1 %v2144_v0 }
 0x26a   : > { %1663 = vmatmul.mubr.msk.bf16.vlgmr.msra.gmra.mrb[16].mxu1 %vm746_vm3, %v1111_v41 }
 0x26b   : > { %1676 = vmatprep.mubr.msk.bf16.mxu1 %vm2145_vm0, %v2144_v0 }
 0x2b8   : > { %v787_v47 = vpop.f32.mrb[4].mxu1 }
 0x2b9   : > { %v796_v48 = vsel %vm2609_vm6, -1e+30, %v787_v47  ;;  %v1628_v49 = vpop.f32.mrb[5].mxu1 }
 0x2ba   : > { %v790_v50 = vpop.f32.mrb[6].mxu1  ;;  %v797_v51 = vsel %vm746_vm3, %v796_v48, -inf }
 0x2bb   : > { %798 = vmax.xlane.f32.xlu0 %v797_v51  ;;  %v1629_v52 = vpop.f32.mrb[7].mxu1 }
 0x32d   : > { %v907_v53 = vpop.f32.mrb[8].mxu1 }
 0x32e   : > { %v913_v54 = vsel %vm2609_vm6, -1e+30, %v907_v53  ;;  %v1640_v55 = vpop.f32.mrb[9].mxu1 }
 0x32f   : > { %v910_v56 = vpop.f32.mrb[10].mxu1  ;;  %v914_v57 = vsel %vm746_vm3, %v913_v54, -inf }
 0x330   : > { %915 = vmax.xlane.f32.xlu1 %v914_v57  ;;  %v1641_v58 = vpop.f32.mrb[11].mxu1 }
 0x331   : > { %v1811_v58 = vld [vmem:[#allocation16] sm:$0xff]  }
 0x332   : > { %1673 = vmatpush3.bf16.msra.mxu1 %v1811_v58 }
 0x333   : > { %1674 = vmatprep.subr.bf16.mxu1 %v2144_v0 }
 0x335   : > { %v1032_v59 = vpop.f32.mrb[12].mxu1 }
 0x336   : > { %v1038_v60 = vsel %vm2609_vm6, -1e+30, %v1032_v59  ;;  %v1652_v61 = vpop.f32.mrb[13].mxu1 }
 0x337   : > { %v1035_v62 = vpop.f32.mrb[14].mxu1  ;;  %v1039_v63 = vsel %vm746_vm3, %v1038_v60, -inf  ;;  %v1812_v61 = vld [vmem:[#allocation16 + $0x8] sm:$0xff]  }
 0x338   : > { %1040 = vmax.xlane.f32.xlu0 %v1039_v63  ;;  %v1653_v1 = vpop.f32.mrb[15].mxu1  ;;  %1675 = vmatpush3.bf16.msra.mxu1 %v1812_v61 }
 0x33d   : > { %v1157_v2 = vpop.f32.mrb[16].mxu1 }
 0x33e   : > { %v1163_v3 = vsel %vm2609_vm6, -1e+30, %v1157_v2  ;;  %v1664_v4 = vpop.f32.mrb[17].mxu1 }
 0x33f   : > { %v1160_v5 = vpop.f32.mrb[18].mxu1  ;;  %v1164_v6 = vsel %vm746_vm3, %v1163_v3, -inf }
 0x340   : > { %1165 = vmax.xlane.f32.xlu0 %v1164_v6  ;;  %v1665_v9 = vpop.f32.mrb[19].mxu1 }
 0x341   : > { %928 = vrot.lane.b32.xlu1 %v1808_v8, %s2147_s22  ;;  %s2035_s22 = scalar_lea.vmem %s2667_s15, 128 }
 0x342   : > { %p2036_p12 = scmp.ne.s32.totalorder %s2667_s15, %s2035_s22 }
 0x344   : > { %p2037_p3 = pnand %p2036_p12, %p2795_p11 }
 0x345   : > { %1178 = vrot.lane.b32.xlu1 %v1809_v10, %s2148_s27  ;;  %s2039_s27 = sshll.u32 %s2153_s25, 4  ;;  %s2040_s27 = int_to_ptr.vmem [resolvable:$false] %s2039_s27 }
 0x346   : > { %p2038_p0 = pneg %p2037_p3  ;;  %p2042_p13 = scmp.lt.s32.totalorder %s2667_s15, %s2040_s27 }
 0x348   : > { %v799_v11 = vpop.xlane.xlu0 %798 }
 0x349   : > { %v800_v12 = vsub.f32 %v796_v48, %v799_v11 }
 0x34b   : > { %v801_v13 = vmul.f32 1.442695, %v800_v12 }
 0x34d   : > { %1813 = vpow2.f32 %v801_v13 }
 0x356   : > { %1053 = vrot.lane.b32.xlu0 %v1810_v14, %s2146_s30  ;;  %s1327_s30 = scalar_lea.sflag [#allocation7], %s2510_s10 }
 0x357   : > { %v1814_v15 = vpop.eup %1813 }
 0x358   : > { %v807_v16 = vpack.c.bf16 %v1814_v15, %v1814_v15  ;;  %v803_v32 = vsel %vm746_vm3, %v1814_v15, 0.0 }
 0x35a   : > { %1633 = vmatmul.mubr.msk.bf16.vlgmr.msra.gmra.mrb[8].mxu0 %vm746_vm3, %v807_v16 }
 0x35b   : > { %1644 = vmatprep.mubr.msk.bf16.mxu0 %vm2145_vm0, %v2144_v0 }
 0x3bd   : > { %v916_v17 = vpop.xlane.xlu1 %915 }
 0x3be   : > { %v917_v18 = vsub.f32 %v913_v54, %v916_v17 }
 0x3c0   : > { %v918_v19 = vmul.f32 1.442695, %v917_v18 }
 0x3c1   : > { %v929_v20 = vpop.permute.xlu1 %928 }
 0x3c2   : > { %1815 = vpow2.f32 %v918_v19  ;;  %v934_v21 = vsel %vm811_vm4, %v929_v20, 0 }
 0x3c3   : > { %1643 = vmatpush3.bf16.msra.mxu0 %v934_v21 }
 0x3c4   : > { %1654 = vmatprep.subr.bf16.mxu0 %v2144_v0 }
 0x3c5   : > { %v1041_v22 = vpop.xlane.xlu0 %1040  ;;  %v1179_v35 = vpop.permute.xlu1 %1178 }
 0x3c6   : > { %v1042_v23 = vsub.f32 %v1038_v60, %v1041_v22  ;;  %v1184_v38 = vsel %vm811_vm4, %v1179_v35, 0 }
 0x3c8   : > { %v1043_v24 = vmul.f32 1.442695, %v1042_v23 }
 0x3ca   : > { %1817 = vpow2.f32 %v1043_v24 }
 0x3cc   : > { %v1816_v25 = vpop.eup %1815 }
 0x3cd   : > { %v1166_v26 = vpop.xlane.xlu0 %1165  ;;  %v920_v27 = vsel %vm746_vm3, %v1816_v25, 0.0  ;;  %v924_v28 = vpack.c.bf16 %v1816_v25, %v1816_v25 }
 0x3ce   : > { %v1167_v29 = vsub.f32 %v1163_v3, %v1166_v26  ;;  %921 = vadd.xlane.f32.xlu1 %v920_v27 }
 0x3cf   : > { %1645 = vmatmul.mubr.msk.bf16.vlgmr.msra.gmra.mrb[12].mxu0 %vm746_vm3, %v924_v28  ;;  %v1566_v28 = vld [vmem:[%s2792_s20] ss:$0 sm:$0xff] }
 0x3d0   : > { %v1168_v30 = vmul.f32 1.442695, %v1167_v29  ;;  %1656 = vmatprep.mubr.msk.bf16.mxu0 %vm2145_vm0, %v2144_v0 }
 0x3d1   : > { %v1054_v31 = vpop.permute.xlu0 %1053 }
 0x3d2   : > { %1819 = vpow2.f32 %v1168_v30  ;;  %v1059_v33 = vsel %vm811_vm4, %v1054_v31, 0  ;;  %804 = vadd.xlane.f32.xlu1 %v803_v32  ;;  %v1567_v30 = vld [vmem:[%s2793_s1] ss:$0 sm:$0xff] }
 0x3d3   : > { %1655 = vmatpush3.bf16.msra.mxu0 %v1059_v33 }
 0x3d4   : > { %v1818_v34 = vpop.eup %1817  ;;  %1666 = vmatprep.subr.bf16.mxu0 %v2144_v0 }
 0x3d5   : > { %v1045_v36 = vsel %vm746_vm3, %v1818_v34, 0.0  ;;  %v1049_v37 = vpack.c.bf16 %v1818_v34, %v1818_v34 }
 0x3d6   : > { %1046 = vadd.xlane.f32.xlu0 %v1045_v36 }
 0x3d7   : > { %1657 = vmatmul.mubr.msk.bf16.vlgmr.msra.gmra.mrb[16].mxu0 %vm746_vm3, %v1049_v37 }
 0x3d8   : > { %1667 = vmatpush3.bf16.msra.mxu0 %v1184_v38  ;;  %1668 = vmatprep.mubr.msk.bf16.mxu0 %vm2145_vm0, %v2144_v0 }
 0x3dc   : > { %v1820_v39 = vpop.eup %1819 }
 0x3dd   : > { %v1170_v40 = vsel %vm746_vm3, %v1820_v39, 0.0  ;;  %v1174_v41 = vpack.c.bf16 %v1820_v39, %v1820_v39 }
 0x3de   : > { %1171 = vadd.xlane.f32.xlu0 %v1170_v40 }
 0x3df   : > { %1669 = vmatmul.mubr.msk.bf16.vlgmr.msra.gmra.mrb[20].mxu0 %vm746_vm3, %v1174_v41 }
 0x42d   : > { %v849_v42 = vpop.f32.mrb[8].mxu0 }
 0x42e   : > { %v1634_v43 = vpop.f32.mrb[9].mxu0 }
 0x42f   : > { %v852_v44 = vpop.f32.mrb[10].mxu0 }
 0x430   : > { %v1635_v45 = vpop.f32.mrb[11].mxu0 }
 0x45b   : > { %v922_v46 = vpop.xlane.xlu1 %921 }
 0x45f   : > { %v805_v47 = vpop.xlane.xlu1 %804 }
 0x460   : > { %1821 = vrcp.f32 %v805_v47 }
 0x461   : > { %1823 = vrcp.f32 %v922_v46 }
 0x463   : > { %v1047_v50 = vpop.xlane.xlu0 %1046 }
 0x464   : > { %1825 = vrcp.f32 %v1047_v50 }
 0x46a   : > { %v1822_v48 = vpop.eup %1821 }
 0x46b   : > { %v855_v49 = vmul.f32 %v1822_v48, %v849_v42  ;;  %v1824_v51 = vpop.eup %1823  ;;  %v1172_v56 = vpop.xlane.xlu0 %1171 }
 0x46c   : > { %1827 = vrcp.f32 %v1172_v56 }
 0x46d   : > { %856 = vst.msk [vmem:[#allocation4] sm:$0xff] %vm746_vm3, %v855_v49 }
 0x46e   : > { %v1826_v59 = vpop.eup %1825 }
 0x476   : > { %v1828_v3 = vpop.eup %1827 }
 0x4a2   : > { %v970_v52 = vpop.f32.mrb[12].mxu0 }
 0x4a3   : > { %v976_v53 = vmul.f32 %v1824_v51, %v970_v52  ;;  %v1646_v54 = vpop.f32.mrb[13].mxu0 }
 0x4a4   : > { %v973_v55 = vpop.f32.mrb[14].mxu0 }
 0x4a5   : > { %978 = vrot.lane.b32.xlu0 %v976_v53, %s2150_s13  ;;  %v1647_v57 = vpop.f32.mrb[15].mxu0  ;;  %s2041_s13 = scalar_lea.vmem %s2040_s27, 256 }
 0x4a6   : > { %p2043_p9 = scmp.lt.s32.totalorder %s2041_s13, %s2035_s22 }
 0x4a8   : > { %p2044_p5 = por %p2043_p9, %p2042_p13 }
 0x4aa   : > { %v1095_v60 = vpop.f32.mrb[16].mxu0  ;;  %p2045_p7 = pnand %p2044_p5, %p2038_p0 }
 0x4ab   : > { %v1101_v62 = vmul.f32 %v1826_v59, %v1095_v60  ;;  %v1658_v63 = vpop.f32.mrb[17].mxu0 }
 0x4ac   : > { %v1098_v1 = vpop.f32.mrb[18].mxu0 }
 0x4ad   : > { %1103 = vrot.lane.b32.xlu1 %v1101_v62, %s2151_s4  ;;  %v1659_v2 = vpop.f32.mrb[19].mxu0 }
 0x4b2   : > { %v1220_v4 = vpop.f32.mrb[20].mxu0 }
 0x4b3   : > { %v1226_v5 = vmul.f32 %v1828_v3, %v1220_v4  ;;  %v1670_v6 = vpop.f32.mrb[21].mxu0 }
 0x4b4   : > { %v1223_v8 = vpop.f32.mrb[22].mxu0 }
 0x4b5   : > { %1228 = vrot.lane.b32.xlu1 %v1226_v5, %s2152_s26  ;;  %v1671_v9 = vpop.f32.mrb[23].mxu0 }
 0x517   : > { %v979_v10 = vpop.permute.xlu0 %978 }
 0x518   : > { %982 = vst.msk [vmem:[#allocation4] sm:$0xff] %vm981_vm7, %v979_v10 }
 0x51f   : > { %v1104_v11 = vpop.permute.xlu1 %1103 }
 0x520   : > { %1107 = vst.msk [vmem:[#allocation4] sm:$0xff] %vm1106_vm8, %v1104_v11 }
 0x527   : > { %v1229_v0 = vpop.permute.xlu1 %1228 }
 0x528   : > { %1232 = vst.msk [vmem:[#allocation4] sm:$0xff] %vm1231_vm9, %v1229_v0 }
 0x52f   : > { %v1233_v12 = vld [vmem:[#allocation4] sm:$0xff] }
 0x530   : > { %v1234_v13 = vpack.c.bf16 %v1233_v12, %v1233_v12 }
 0x532   : > { %1677 = vmatmul.mubr.msk.bf16.vlgmr.msra.gmra.mrb[20].mxu1 %vm572_vm1, %v1234_v13 }
 0x605   : > { %v1288_v14 = vpop.f32.mrb[20].mxu1 }
 0x606   : > { %v1289_v15 = vadd.f32 %v1288_v14, %v2564_v7  ;;  %v1678_v16 = vpop.f32.mrb[21].mxu1 }
 0x607   : > { %v1291_v17 = vpop.f32.mrb[22].mxu1 }
 0x608   : > { %v1679_v18 = vpop.f32.mrb[23].mxu1  ;;  %v1294_v19 = vsel %vm572_vm1, %v1289_v15, 0.0 }
 0x609   : > { %1295 = vadd.xlane.f32.xlu0 %v1294_v19 }
 0x696   : > { %v1296_v20 = vpop.xlane.xlu0 %1295 }
 0x697   : > { %v1298_v21 = vmul.f32 0.03125, %v1296_v20 }
 0x699   : > { %v1299_v22 = vsub.f32 %v1289_v15, %v1298_v21 }
 0x69b   : > { %v1300_v23 = vmul.f32 %v1299_v22, %v1299_v22 }
 0x69d   : > { %v1301_v24 = vsel %vm572_vm1, %v1300_v23, 0.0 }
 0x69e   : > { %1302 = vadd.xlane.f32.xlu1 %v1301_v24 }
 0x72b   : > { %v1303_v25 = vpop.xlane.xlu1 %1302 }
 0x72c   : > { %v1305_v26 = vmul.f32 0.032258064, %v1303_v25 }
 0x72e   : > { %1829 = vrsqrt.f32 %v1305_v26 }
 0x738   : > { %v1830_v7 = vpop.eup %1829 }
 0x739   : > { %v1307_v27 = vmin.f32 %v1830_v7, 1000000.0 }
 0x73b   : > { %v1308_v29 = vmul.f32 %v1307_v27, %v1299_v22 }
 0x73d   : > { %v1316_v31 = vmul.f32 %v1566_v28, %v1308_v29 }
 0x73f   : > { %v1324_v32 = vadd.f32 %v1567_v30, %v1316_v31 }
 0x741   : > { %1325 = vst.msk [vmem:[%s545_s11] sm:$0xff] %vm572_vm1, %v1324_v32 }
 0x742   : > { %2048 = shalt.err (!%p2045_p7)
}
 0x743   : > { %s2049_s10 = scalar_lea.hbm %s2665_s12, 128  ;;  %s2053_s24 = scalar_lea.hbm %s2794_s19, 256 }
 0x744   : > { %p2050_p10 = scmp.ne.s32.totalorder %s2665_s12, %s2049_s10  ;;  %p2054_p4 = scmp.lt.u32.totalorder %s2665_s12, %s2794_s19 }
 0x745   : > { %p2055_p1 = scmp.lt.u32.totalorder %s2053_s24, %s2049_s10  ;;  %p2057_p12 = scmp.lt.u32.totalorder %s2049_s10, %s2665_s12 }
 0x746   : > { %p2051_p6 = pnand %p2050_p10, %p2795_p11 }
 0x747   : > { %p2056_p8 = por %p2055_p1, %p2054_p4 }
 0x748   : > { %p2052_p2 = pneg %p2051_p6 }
 0x749   : > { %p2058_p3 = por %p2057_p12, %p2056_p8 }
 0x74b   : > { %p2059_p0 = pnand %p2058_p3, %p2052_p2 }
 0x74d   : > { %2062 = shalt.err (!%p2059_p0)
}
 0x74e   : > { %1700 = dma.vmem_to_hbm [thread:$0]  (%p2795_p11), %s2667_s15, 128, %s2665_s12, %s1327_s30  }
 0x74f PF: > { %s2796_s20 = sld [smem:[#allocation24_spill]]  ;;  %s2797_s9 = sld [smem:[#allocation27_spill]] }
 0x750   : > { %p2799_p9 = scmp.ge.s32.totalorder %s2133_s18, 2 }
 0x755   : > { %s1353_s29 = sand.u32 1, %s2796_s20   ;;  %p2798_p13 = scmp.ne.s32.totalorder %s2797_s9, 0 }
 0x756   : > { %s1354_s1 = scalar_lea.sflag [#allocation7], %s1353_s29 }
 0x757   : > { %p1726_p5 = pnand %p2799_p9, %p2798_p13 }
 0x759   : > { %2108 = dma.done.wait (!%p1726_p5), %s1354_s1, 128  }
 0x75a   : > { %2110 = vsyncadd (!%p1726_p5), %s1354_s1, 4294967168  ;;  %s33_s18 = sadd.s32 1, %s2133_s18   ;;  %s2800_s16 = sld [smem:[#allocation25_spill]] }
 0x75b   : > { %p30_p7 = scmp.ge.s32.totalorder %s33_s18, 4   ;;  %s2801_s15 = sld [smem:[#allocation30_spill]] }
 0x75c   : > { %s2802_s28 = sld [smem:[#allocation28_spill]]  ;;  %s2803_s13 = smov %s2117_s14 }
 0x75d   :  { %32 = sbr.rel (!%p30_p7) target bundleno = 18 (0x12), region = 158 }
 0x760   : > { %s2804_s14 = smov %s2800_s16  ;;  %s2805_s16 = smov %s2129_s17 }
 0x762   : > { %s2806_s17 = smov %s2802_s28 }
 0x764   :  { %1359 = vsyncpa [#allocation6], 1 }
 0x765   :  { %1361 = vsyncpa [#allocation6 + $0x1], 1 }
 0x766   :  { %1362 = vsyncpa [#allocation9], 1 }
 0x767   :  { %1364 = vsyncpa [#allocation9 + $0x1], 1 }
 0x768   :  { %1365 = vsyncpa [#allocation12], 1 }
 0x769   :  { %1367 = vsyncpa [#allocation12 + $0x1], 1 }
 0x76a   :  { %1368 = vsyncpa [#allocation15], 1 }
 0x76b   :  { %1369 = vsyncpa [#allocation7], 1 }
 0x76c   :  { %1371 = vsyncpa [#allocation7 + $0x1], 1 }

</bundles_post_ra>
